<compile_context>
chip_gen: v5e
topology: v5e:2x2
jax: 0.10.0
libtpu: 0.0.40
codegen_flags: <defaults>
</compile_context>

<pallas_src>
import functools

import numpy as np
import jax
import jax.numpy as jnp
from jax.experimental import pallas as pl
from jax.experimental.pallas import tpu as pltpu

LEAKY_SLOPE = 0.2
BN_EPS = 0.8          # nn.BatchNorm2d(out_filters, 0.8) -> eps = 0.8 (training-mode stats)
NEG_BIG = -1.0e9      # bias for padded softmax lanes


def _fused_disc_kernel(*refs, n_batch, conv_cfg, n_h4):
    """refs = [x, (band_l, bias_l) x n_layers, w1s, b1, w2, b2, out, scratch_a, scratch_b].

    Layout: activations are 2D (rows, lanes) with rows = (n, h) and lanes = (w, c).
    Each scratch buffer keeps one zero row at the top so the conv's pad-above row is a
    plain strided load; the per-image boundary is fixed with an iota mask.
    """
    n_layers = len(conv_cfg)
    x_ref = refs[0]
    conv_refs = refs[1:1 + 2 * n_layers]
    w1_ref, b1_ref, w2_ref, b2_ref, out_ref, s_a, s_b = refs[1 + 2 * n_layers:]

    # Zero the pad row of both scratch buffers and stage the input behind it.
    s_a[0:1, :] = jnp.zeros((1, s_a.shape[1]), s_a.dtype)
    s_b[0:1, :] = jnp.zeros((1, s_b.shape[1]), s_b.dtype)
    r_in0 = x_ref.shape[0]
    lane0 = x_ref.shape[1]
    s_a[1:1 + r_in0, 0:lane0] = x_ref[...]

    src, dst = s_a, s_b
    for l in range(n_layers):
        h_out, w_out, c_out, l_in, bn = conv_cfg[l]
        b_ref = conv_refs[2 * l]
        bias_ref = conv_refs[2 * l + 1]
        r_out = n_batch * h_out
        l_out = w_out * c_out

        # Conv 3x3 / stride 2 / pad 1: three strided row views (taps kh = 0, 1, 2) feeding a
        # single K-stacked MXU matmul.  src row (1 + r) holds activation row r; row 0 is the
        # zero pad row, so the kh=0 tap of output row r is simply src[2*r].
        rows_km1 = src[pl.ds(0, r_out, stride=2), pl.ds(0, l_in)]   # input row 2*ho - 1
        rows_ke = src[pl.ds(1, r_out, stride=2), pl.ds(0, l_in)]    # input row 2*ho
        rows_kp1 = src[pl.ds(2, r_out, stride=2), pl.ds(0, l_in)]   # input row 2*ho + 1
        ridx = jax.lax.broadcasted_iota(jnp.int32, (r_out, 1), 0)
        rows_km1 = jnp.where(ridx % h_out == 0, 0.0, rows_km1)      # per-image top pad row
        cat = jnp.concatenate([rows_km1, rows_ke, rows_kp1], axis=-1).astype(jnp.bfloat16)
        y = jnp.dot(cat, b_ref[...], preferred_element_type=jnp.float32) + bias_ref[...]

        y = jnp.where(y > 0, y, LEAKY_SLOPE * y)       # LeakyReLU(0.2); Dropout2d(0) = id
        if bn:
            # Training-mode BatchNorm2d (biased stats, gamma=1, beta=0, eps=0.8).
            # Per-channel pooling over the (w, c) lane groups via log2(Wo) lane rolls + adds
            # (XLU/VPU only -- no MXU, no f32 matmul emulation).
            count = float(r_out * w_out)               # N * Ho * Wo
            s1 = jnp.sum(y, axis=0, keepdims=True)     # (1, Wo*Cout)
            s2 = jnp.sum(y * y, axis=0, keepdims=True)
            g = w_out
            while g > 1:                               # tree-reduce the Wo groups
                half = g // 2
                s1 = s1 + pltpu.roll(s1, shift=l_out - half * c_out, axis=1)
                s2 = s2 + pltpu.roll(s2, shift=l_out - half * c_out, axis=1)
                g = half
            mean = s1 * (1.0 / count)                  # lanes [0:Cout] are the valid stats
            var = jnp.maximum(s2 * (1.0 / count) - mean * mean, 0.0)
            scale = jax.lax.rsqrt(var + BN_EPS)
            shift = -mean * scale
            if w_out > 1:                              # broadcast back across the Wo groups
                lane = jax.lax.broadcasted_iota(jnp.int32, (1, l_out), 1)
                scale = jnp.where(lane < c_out, scale, 0.0)
                shift = jnp.where(lane < c_out, shift, 0.0)
                g = 1
                while g < w_out:
                    scale = scale + pltpu.roll(scale, shift=g * c_out, axis=1)
                    shift = shift + pltpu.roll(shift, shift=g * c_out, axis=1)
                    g *= 2
            y = y * scale + shift
        dst[1:1 + r_out, 0:l_out] = y                  # f32 activation for the next layer
        src, dst = dst, src

    # Head: flatten (NCHW view(N,-1) order folded into w1 on the host) -> Linear -> ReLU
    #       -> Linear -> Softmax(dim=1).  Padded hidden/output lanes are exact no-ops.
    l4 = conv_cfg[-1][1] * conv_cfg[-1][2]
    h = None
    for h4 in range(n_h4):
        rows = src[pl.ds(1 + h4, n_batch, stride=n_h4), pl.ds(0, l4)].astype(jnp.bfloat16)
        part = jnp.dot(rows, w1_ref[h4], preferred_element_type=jnp.float32)
        h = part if h is None else h + part
    h = jnp.maximum(h + b1_ref[...], 0.0)
    logits = jnp.dot(h.astype(jnp.bfloat16), w2_ref[...],
                     preferred_element_type=jnp.float32) + b2_ref[...]
    m = jnp.max(logits, axis=-1, keepdims=True)
    e = jnp.exp(logits - m)                            # padded lanes underflow to exactly 0
    out_ref[...] = e / jnp.sum(e, axis=-1, keepdims=True)


def pack_params(params, channels, img_size):
    """One-time host-side repacking of the PyTorch-layout weights.

    Folds the 3x3/stride-2/pad-1 structure along W into a stacked banded matrix per conv
    (K = 3*W*Cin), the NCHW flatten order into the first Linear, and pads every weight so
    all activations / outputs are 128-lane dense.  Independent of batch size.
    """
    H = W = img_size
    cin = channels
    operands = []
    conv_cfg = []
    for l, (w, b, bn) in enumerate(params["convs"]):
        w = np.asarray(w, np.float32)                  # (3, 3, Cin, Cout) = HWIO
        b = np.asarray(b, np.float32)
        cout = w.shape[-1]
        ho, wo = H // 2, W // 2
        if bn:
            assert wo & (wo - 1) == 0, "BN lane-roll pooling assumes power-of-two Wo"
        if l == 0 and W * cin < 128:
            cin_lane = int(np.ceil(128 / W))           # zero-pad input channels: lane-dense
        else:
            cin_lane = cin                             # later layers already 128 lanes
        l_in = W * cin_lane
        band = np.zeros((3 * l_in, wo * cout), np.float32)
        for kh in range(3):
            for kw in range(3):
                for wo_i in range(wo):
                    wi = 2 * wo_i + kw - 1
                    if 0 <= wi < W:
                        r0 = kh * l_in + wi * cin_lane
                        band[r0:r0 + cin, wo_i * cout:(wo_i + 1) * cout] = w[kh, kw]
        bias_row = np.tile(b, wo)[None, :]             # (1, Wo*Cout)
        operands += [jnp.asarray(band, jnp.bfloat16), jnp.asarray(bias_row, jnp.float32)]
        conv_cfg.append((ho, wo, cout, l_in, bool(bn)))
        H, W, cin = ho, wo, cout
    cin_lane0 = conv_cfg[0][3] // img_size

    # Head: fold the PyTorch NCHW out.view(N, -1) flatten order into the first Linear and
    # pad hidden -> 128 lanes, classes -> 128 lanes (pad class bias = -1e9 so softmax over
    # the padded lanes equals softmax over the 2 real classes).
    w1, b1, w2, b2 = [np.asarray(a, np.float32) for a in params["head"]]
    H4, W4, C4 = H, W, cin
    hidden = w1.shape[1]
    n_cls = w2.shape[1]
    hidden_p = max(128, int(np.ceil(hidden / 128)) * 128)
    out_p = 128
    assert w1.shape[0] == C4 * H4 * W4
    w1s = np.transpose(w1.reshape(C4, H4, W4, hidden), (1, 2, 0, 3)).reshape(H4, W4 * C4, hidden)
    w1s = np.pad(w1s, ((0, 0), (0, 0), (0, hidden_p - hidden)))
    b1_row = np.zeros((1, hidden_p), np.float32)
    b1_row[0, :hidden] = b1
    w2p = np.zeros((hidden_p, out_p), np.float32)
    w2p[:hidden, :n_cls] = w2
    b2_row = np.full((1, out_p), NEG_BIG, np.float32)
    b2_row[0, :n_cls] = b2
    operands += [jnp.asarray(w1s, jnp.bfloat16), jnp.asarray(b1_row, jnp.float32),
                 jnp.asarray(w2p, jnp.bfloat16), jnp.asarray(b2_row, jnp.float32)]
    config = (tuple(conv_cfg), cin_lane0, H4, n_cls)
    return tuple(operands), config


@functools.partial(jax.jit, static_argnums=(2,))
def discriminator_forward(img_nchw, operands, config):
    """Jitted forward: tiny layout plumbing + one fused pallas_call.  `operands`/`config`
    come from pack_params (built once, cached on device)."""
    conv_cfg, cin_lane0, n_h4, n_cls = config
    N, C, H0, W0 = img_nchw.shape
    x = jnp.transpose(img_nchw, (0, 2, 3, 1)).astype(jnp.float32)       # NHWC
    if cin_lane0 > C:
        x = jnp.pad(x, ((0, 0), (0, 0), (0, 0), (0, cin_lane0 - C)))    # lane-dense layer 0
    x = x.reshape(N * H0, W0 * cin_lane0)                               # rows=(n,h), lanes=(w,c)

    lane_max = max([cfg[3] for cfg in conv_cfg] + [cfg[1] * cfg[2] for cfg in conv_cfg])
    scratch_rows = 1 + N * H0                                           # +1 zero pad row
    out_lanes = int(operands[-1].shape[1])
    n_in = 1 + len(operands)

    out = pl.pallas_call(
        functools.partial(_fused_disc_kernel, n_batch=N, conv_cfg=conv_cfg, n_h4=n_h4),
        out_shape=jax.ShapeDtypeStruct((N, out_lanes), jnp.float32),
        in_specs=[pl.BlockSpec(memory_space=pltpu.MemorySpace.VMEM)] * n_in,
        out_specs=pl.BlockSpec(memory_space=pltpu.MemorySpace.VMEM),
        scratch_shapes=[pltpu.VMEM((scratch_rows, lane_max), jnp.float32),
                        pltpu.VMEM((scratch_rows, lane_max), jnp.float32)],
    )(x, *operands)
    return out[:, :n_cls]


def reference_forward(img_nchw, params):
    """Pure-JAX (f32) reference matching the PyTorch module in training mode."""
    x = img_nchw.astype(jnp.float32)
    for (w, b, bn) in params["convs"]:
        x = jax.lax.conv_general_dilated(
            x, w, window_strides=(2, 2), padding=((1, 1), (1, 1)),
            dimension_numbers=("NCHW", "HWIO", "NCHW"))
        x = x + b.reshape(1, -1, 1, 1)
        x = jnp.where(x > 0, x, LEAKY_SLOPE * x)
        if bn:
            mean = jnp.mean(x, axis=(0, 2, 3), keepdims=True)
            var = jnp.mean((x - mean) ** 2, axis=(0, 2, 3), keepdims=True)
            x = (x - mean) * jax.lax.rsqrt(var + BN_EPS)
    flat = x.reshape(x.shape[0], -1)                     # NCHW flatten = out.view(N, -1)
    w1, b1, w2, b2 = params["head"]
    h = jnp.maximum(flat @ w1 + b1, 0.0)
    logits = h @ w2 + b2
    return jax.nn.softmax(logits, axis=-1)


def init_params(key, channels, img_size, hidden):
    chans = [channels, 16, 32, 64, 128]
    bns = [False, True, True, True]
    convs = []
    for i in range(4):
        cin, cout = chans[i], chans[i + 1]
        key, kw, kb = jax.random.split(key, 3)
        scale = 1.0 / jnp.sqrt(9.0 * cin)
        w = jax.random.normal(kw, (3, 3, cin, cout), jnp.float32) * scale   # HWIO
        b = jax.random.normal(kb, (cout,), jnp.float32) * scale
        convs.append((w, b, bns[i]))
    ds = img_size // (2 ** 4)
    in_feat = 128 * ds * ds
    key, k1, k2, k3, k4 = jax.random.split(key, 5)
    w1 = jax.random.normal(k1, (in_feat, hidden), jnp.float32) / jnp.sqrt(1.0 * in_feat)
    b1 = jax.random.normal(k2, (hidden,), jnp.float32) / jnp.sqrt(1.0 * in_feat)
    w2 = jax.random.normal(k3, (hidden, 2), jnp.float32) / jnp.sqrt(1.0 * hidden)
    b2 = jax.random.normal(k4, (2,), jnp.float32) / jnp.sqrt(1.0 * hidden)
    return {"convs": convs, "head": (w1, b1, w2, b2)}


if __name__ == "__main__":
    batch, channels, img_size, hidden = 2, 4, 16, 32
    key = jax.random.PRNGKey(0)
    key, kimg = jax.random.split(key)
    img = jax.random.normal(kimg, (batch, channels, img_size, img_size), jnp.float32)
    params = init_params(key, channels, img_size, hidden)

    # Pack weights ONCE (host numpy -> device arrays); repeated calls only hit the jit cache.
    operands, config = pack_params(params, channels, img_size)

    out = jax.block_until_ready(discriminator_forward(img, operands, config))
    out = jax.block_until_ready(discriminator_forward(img, operands, config))  # cached path

    assert out.shape == (batch, 2), out.shape
    assert bool(jnp.all(jnp.isfinite(out)))
    assert bool(jnp.allclose(jnp.sum(out, axis=-1), 1.0, atol=1e-4))   # softmax rows sum to 1

    ref = jax.block_until_ready(reference_forward(img, params))
    err = float(jnp.max(jnp.abs(out - ref)))
    assert err < 5e-2, f"max |pallas - reference| = {err}"             # bf16-operand tolerance
    print("KERNEL_OK")
</pallas_src>

<mosaic_0001>
module attributes {stable_mosaic.version = 11 : i64} {
  func.func @_fused_disc_kernel(%arg0: memref<32x128xf32, #tpu.memory_space<vmem>>, %arg1: memref<384x128xbf16, #tpu.memory_space<vmem>>, %arg2: memref<1x128xf32, #tpu.memory_space<vmem>>, %arg3: memref<384x128xbf16, #tpu.memory_space<vmem>>, %arg4: memref<1x128xf32, #tpu.memory_space<vmem>>, %arg5: memref<384x128xbf16, #tpu.memory_space<vmem>>, %arg6: memref<1x128xf32, #tpu.memory_space<vmem>>, %arg7: memref<384x128xbf16, #tpu.memory_space<vmem>>, %arg8: memref<1x128xf32, #tpu.memory_space<vmem>>, %arg9: memref<1x128x128xbf16, #tpu.memory_space<vmem>>, %arg10: memref<1x128xf32, #tpu.memory_space<vmem>>, %arg11: memref<128x128xbf16, #tpu.memory_space<vmem>>, %arg12: memref<1x128xf32, #tpu.memory_space<vmem>>, %arg13: memref<2x128xf32, #tpu.memory_space<vmem>>, %arg14: memref<33x128xf32, #tpu.memory_space<vmem>>, %arg15: memref<33x128xf32, #tpu.memory_space<vmem>>) attributes {dimension_semantics = [], scalar_prefetch = 0 : i64, scratch_operands = 2 : i64, tpu.core_type = #tpu.core_type<tc>} {
    %cst = arith.constant 0.000000e+00 : f32
    %0 = vector.broadcast %cst : f32 to vector<1x128xf32>
    %c0 = arith.constant 0 : index
    %c0_0 = arith.constant 0 : index
    %1 = vector.load %arg14[%c0, %c0_0] : memref<33x128xf32, #tpu.memory_space<vmem>>, vector<1x128xf32>
    tpu.vector_store %arg14[%c0, %c0_0], %0 {strides = array<i32>} : memref<33x128xf32, #tpu.memory_space<vmem>>, vector<1x128xf32>,
    %cst_1 = arith.constant 0.000000e+00 : f32
    %2 = vector.broadcast %cst_1 : f32 to vector<1x128xf32>
    %c0_2 = arith.constant 0 : index
    %c0_3 = arith.constant 0 : index
    %3 = vector.load %arg15[%c0_2, %c0_3] : memref<33x128xf32, #tpu.memory_space<vmem>>, vector<1x128xf32>
    tpu.vector_store %arg15[%c0_2, %c0_3], %2 {strides = array<i32>} : memref<33x128xf32, #tpu.memory_space<vmem>>, vector<1x128xf32>,
    %c0_4 = arith.constant 0 : index
    %c0_5 = arith.constant 0 : index
    %4 = vector.load %arg0[%c0_4, %c0_5] : memref<32x128xf32, #tpu.memory_space<vmem>>, vector<32x128xf32>
    %c1 = arith.constant 1 : index
    %c0_6 = arith.constant 0 : index
    %5 = vector.load %arg14[%c1, %c0_6] : memref<33x128xf32, #tpu.memory_space<vmem>>, vector<32x128xf32>
    tpu.vector_store %arg14[%c1, %c0_6], %4 {strides = array<i32>} : memref<33x128xf32, #tpu.memory_space<vmem>>, vector<32x128xf32>,
    %c0_7 = arith.constant 0 : index
    %c0_8 = arith.constant 0 : index
    %6 = tpu.strided_load %arg14[%c0_7, %c0_8] {strides = array<i32: 2, 1>} : memref<33x128xf32, #tpu.memory_space<vmem>>, vector<16x128xf32>
    %c1_9 = arith.constant 1 : index
    %c0_10 = arith.constant 0 : index
    %7 = tpu.strided_load %arg14[%c1_9, %c0_10] {strides = array<i32: 2, 1>} : memref<33x128xf32, #tpu.memory_space<vmem>>, vector<16x128xf32>
    %c2 = arith.constant 2 : index
    %c0_11 = arith.constant 0 : index
    %8 = tpu.strided_load %arg14[%c2, %c0_11] {strides = array<i32: 2, 1>} : memref<33x128xf32, #tpu.memory_space<vmem>>, vector<16x128xf32>
    %9 = tpu.iota {dimensions = array<i32: 0>} : vector<16x1xi32>
    %c8_i32 = arith.constant 8 : i32
    %c0_i32 = arith.constant 0 : i32
    %10 = arith.cmpi eq, %c8_i32, %c0_i32 : i32
    %c1_i32 = arith.constant 1 : i32
    %11 = arith.select %10, %c1_i32, %c8_i32 : i32
    %12 = vector.broadcast %11 : i32 to vector<16x1xi32>
    %13 = arith.remsi %9, %12 : vector<16x1xi32>
    %c0_i32_12 = arith.constant 0 : i32
    %14 = vector.broadcast %c0_i32_12 : i32 to vector<16x1xi32>
    %15 = arith.cmpi ne, %13, %14 : vector<16x1xi32>
    %c0_i32_13 = arith.constant 0 : i32
    %16 = vector.broadcast %c0_i32_13 : i32 to vector<16x1xi32>
    %17 = arith.cmpi slt, %13, %16 : vector<16x1xi32>
    %c0_i32_14 = arith.constant 0 : i32
    %18 = arith.cmpi slt, %11, %c0_i32_14 : i32
    %19 = vector.broadcast %18 : i1 to vector<16x1xi1>
    %20 = vector.broadcast %19 : vector<16x1xi1> to vector<16x1xi1>
    %21 = arith.xori %17, %20 : vector<16x1xi1>
    %22 = arith.andi %21, %15 : vector<16x1xi1>
    %23 = vector.broadcast %11 : i32 to vector<16x1xi32>
    %24 = arith.addi %13, %23 : vector<16x1xi32>
    %25 = arith.select %22, %24, %13 : vector<16x1xi1>, vector<16x1xi32>
    %c0_i32_15 = arith.constant 0 : i32
    %26 = vector.broadcast %c0_i32_15 : i32 to vector<16x1xi32>
    %27 = arith.cmpi eq, %25, %26 : vector<16x1xi32>
    %cst_16 = arith.constant 0.000000e+00 : f32
    %28 = vector.shape_cast %27 : vector<16x1xi1> to vector<16x1xi1>
    %29 = vector.broadcast %28 : vector<16x1xi1> to vector<16x128xi1>
    %30 = vector.broadcast %cst_16 : f32 to vector<16x128xf32>
    %31 = arith.select %29, %30, %6 : vector<16x128xi1>, vector<16x128xf32>
    %32 = tpu.concatenate %31, %7, %8 in 1 : vector<16x128xf32>, vector<16x128xf32>, vector<16x128xf32> -> vector<16x384xf32>
    %33 = arith.truncf %32 : vector<16x384xf32> to vector<16x384xbf16>
    %c0_17 = arith.constant 0 : index
    %c0_18 = arith.constant 0 : index
    %34 = vector.load %arg1[%c0_17, %c0_18] : memref<384x128xbf16, #tpu.memory_space<vmem>>, vector<384x128xbf16>
    %cst_19 = arith.constant dense<0.000000e+00> : vector<16x128xf32>
    %35 = tpu.matmul %33, %34, %cst_19 {dimension_numbers = #tpu.dot_dimension_numbers<[1], [0], [0], [1], [0, 0, 1, 1], [], []>} : vector<16x384xbf16>, vector<384x128xbf16>, vector<16x128xf32> -> vector<16x128xf32>
    %c0_20 = arith.constant 0 : index
    %c0_21 = arith.constant 0 : index
    %36 = vector.load %arg2[%c0_20, %c0_21] : memref<1x128xf32, #tpu.memory_space<vmem>>, vector<1x128xf32>
    %37 = vector.broadcast %36 : vector<1x128xf32> to vector<16x128xf32>
    %38 = arith.addf %35, %37 : vector<16x128xf32>
    %cst_22 = arith.constant 0.000000e+00 : f32
    %39 = vector.broadcast %cst_22 : f32 to vector<16x128xf32>
    %40 = arith.cmpf ogt, %38, %39 : vector<16x128xf32>
    %cst_23 = arith.constant 2.000000e-01 : f32
    %41 = vector.broadcast %cst_23 : f32 to vector<16x128xf32>
    %42 = arith.mulf %41, %38 : vector<16x128xf32>
    %43 = arith.select %40, %38, %42 : vector<16x128xi1>, vector<16x128xf32>
    %c1_24 = arith.constant 1 : index
    %c0_25 = arith.constant 0 : index
    %44 = vector.load %arg15[%c1_24, %c0_25] : memref<33x128xf32, #tpu.memory_space<vmem>>, vector<16x128xf32>
    tpu.vector_store %arg15[%c1_24, %c0_25], %43 {strides = array<i32>} : memref<33x128xf32, #tpu.memory_space<vmem>>, vector<16x128xf32>,
    %c0_26 = arith.constant 0 : index
    %c0_27 = arith.constant 0 : index
    %45 = tpu.strided_load %arg15[%c0_26, %c0_27] {strides = array<i32: 2, 1>} : memref<33x128xf32, #tpu.memory_space<vmem>>, vector<8x128xf32>
    %c1_28 = arith.constant 1 : index
    %c0_29 = arith.constant 0 : index
    %46 = tpu.strided_load %arg15[%c1_28, %c0_29] {strides = array<i32: 2, 1>} : memref<33x128xf32, #tpu.memory_space<vmem>>, vector<8x128xf32>
    %c2_30 = arith.constant 2 : index
    %c0_31 = arith.constant 0 : index
    %47 = tpu.strided_load %arg15[%c2_30, %c0_31] {strides = array<i32: 2, 1>} : memref<33x128xf32, #tpu.memory_space<vmem>>, vector<8x128xf32>
    %48 = tpu.iota {dimensions = array<i32: 0>} : vector<8x1xi32>
    %c4_i32 = arith.constant 4 : i32
    %c0_i32_32 = arith.constant 0 : i32
    %49 = arith.cmpi eq, %c4_i32, %c0_i32_32 : i32
    %c1_i32_33 = arith.constant 1 : i32
    %50 = arith.select %49, %c1_i32_33, %c4_i32 : i32
    %51 = vector.broadcast %50 : i32 to vector<8x1xi32>
    %52 = arith.remsi %48, %51 : vector<8x1xi32>
    %c0_i32_34 = arith.constant 0 : i32
    %53 = vector.broadcast %c0_i32_34 : i32 to vector<8x1xi32>
    %54 = arith.cmpi ne, %52, %53 : vector<8x1xi32>
    %c0_i32_35 = arith.constant 0 : i32
    %55 = vector.broadcast %c0_i32_35 : i32 to vector<8x1xi32>
    %56 = arith.cmpi slt, %52, %55 : vector<8x1xi32>
    %c0_i32_36 = arith.constant 0 : i32
    %57 = arith.cmpi slt, %50, %c0_i32_36 : i32
    %58 = vector.broadcast %57 : i1 to vector<8x1xi1>
    %59 = vector.broadcast %58 : vector<8x1xi1> to vector<8x1xi1>
    %60 = arith.xori %56, %59 : vector<8x1xi1>
    %61 = arith.andi %60, %54 : vector<8x1xi1>
    %62 = vector.broadcast %50 : i32 to vector<8x1xi32>
    %63 = arith.addi %52, %62 : vector<8x1xi32>
    %64 = arith.select %61, %63, %52 : vector<8x1xi1>, vector<8x1xi32>
    %c0_i32_37 = arith.constant 0 : i32
    %65 = vector.broadcast %c0_i32_37 : i32 to vector<8x1xi32>
    %66 = arith.cmpi eq, %64, %65 : vector<8x1xi32>
    %cst_38 = arith.constant 0.000000e+00 : f32
    %67 = vector.shape_cast %66 : vector<8x1xi1> to vector<8x1xi1>
    %68 = vector.broadcast %67 : vector<8x1xi1> to vector<8x128xi1>
    %69 = vector.broadcast %cst_38 : f32 to vector<8x128xf32>
    %70 = arith.select %68, %69, %45 : vector<8x128xi1>, vector<8x128xf32>
    %71 = tpu.concatenate %70, %46, %47 in 1 : vector<8x128xf32>, vector<8x128xf32>, vector<8x128xf32> -> vector<8x384xf32>
    %72 = arith.truncf %71 : vector<8x384xf32> to vector<8x384xbf16>
    %c0_39 = arith.constant 0 : index
    %c0_40 = arith.constant 0 : index
    %73 = vector.load %arg3[%c0_39, %c0_40] : memref<384x128xbf16, #tpu.memory_space<vmem>>, vector<384x128xbf16>
    %cst_41 = arith.constant dense<0.000000e+00> : vector<8x128xf32>
    %74 = tpu.matmul %72, %73, %cst_41 {dimension_numbers = #tpu.dot_dimension_numbers<[1], [0], [0], [1], [0, 0, 1, 1], [], []>} : vector<8x384xbf16>, vector<384x128xbf16>, vector<8x128xf32> -> vector<8x128xf32>
    %c0_42 = arith.constant 0 : index
    %c0_43 = arith.constant 0 : index
    %75 = vector.load %arg4[%c0_42, %c0_43] : memref<1x128xf32, #tpu.memory_space<vmem>>, vector<1x128xf32>
    %76 = vector.broadcast %75 : vector<1x128xf32> to vector<8x128xf32>
    %77 = arith.addf %74, %76 : vector<8x128xf32>
    %cst_44 = arith.constant 0.000000e+00 : f32
    %78 = vector.broadcast %cst_44 : f32 to vector<8x128xf32>
    %79 = arith.cmpf ogt, %77, %78 : vector<8x128xf32>
    %cst_45 = arith.constant 2.000000e-01 : f32
    %80 = vector.broadcast %cst_45 : f32 to vector<8x128xf32>
    %81 = arith.mulf %80, %77 : vector<8x128xf32>
    %82 = arith.select %79, %77, %81 : vector<8x128xi1>, vector<8x128xf32>
    %cst_46 = arith.constant dense<0.000000e+00> : vector<128xf32>
    %83 = vector.multi_reduction <add>, %82, %cst_46 [0] : vector<8x128xf32> to vector<128xf32>
    %84 = vector.shape_cast %83 : vector<128xf32> to vector<1x128xf32>
    %85 = arith.mulf %82, %82 : vector<8x128xf32>
    %cst_47 = arith.constant dense<0.000000e+00> : vector<128xf32>
    %86 = vector.multi_reduction <add>, %85, %cst_47 [0] : vector<8x128xf32> to vector<128xf32>
    %87 = vector.shape_cast %86 : vector<128xf32> to vector<1x128xf32>
    %c64_i32 = arith.constant 64 : i32
    %88 = tpu.dynamic_rotate %84 by %c64_i32 dim 1 : vector<1x128xf32>, i32 -> vector<1x128xf32>
    %89 = arith.addf %84, %88 : vector<1x128xf32>
    %c64_i32_48 = arith.constant 64 : i32
    %90 = tpu.dynamic_rotate %87 by %c64_i32_48 dim 1 : vector<1x128xf32>, i32 -> vector<1x128xf32>
    %91 = arith.addf %87, %90 : vector<1x128xf32>
    %c96_i32 = arith.constant 96 : i32
    %92 = tpu.dynamic_rotate %89 by %c96_i32 dim 1 : vector<1x128xf32>, i32 -> vector<1x128xf32>
    %93 = arith.addf %89, %92 : vector<1x128xf32>
    %c96_i32_49 = arith.constant 96 : i32
    %94 = tpu.dynamic_rotate %91 by %c96_i32_49 dim 1 : vector<1x128xf32>, i32 -> vector<1x128xf32>
    %95 = arith.addf %91, %94 : vector<1x128xf32>
    %cst_50 = arith.constant 3.125000e-02 : f32
    %96 = vector.broadcast %cst_50 : f32 to vector<1x128xf32>
    %97 = arith.mulf %93, %96 : vector<1x128xf32>
    %cst_51 = arith.constant 3.125000e-02 : f32
    %98 = vector.broadcast %cst_51 : f32 to vector<1x128xf32>
    %99 = arith.mulf %95, %98 : vector<1x128xf32>
    %100 = arith.mulf %97, %97 : vector<1x128xf32>
    %101 = arith.subf %99, %100 : vector<1x128xf32>
    %cst_52 = arith.constant 0.000000e+00 : f32
    %102 = vector.broadcast %cst_52 : f32 to vector<1x128xf32>
    %103 = arith.maximumf %101, %102 : vector<1x128xf32>
    %cst_53 = arith.constant 8.000000e-01 : f32
    %104 = vector.broadcast %cst_53 : f32 to vector<1x128xf32>
    %105 = arith.addf %103, %104 : vector<1x128xf32>
    %106 = math.rsqrt %105 : vector<1x128xf32>
    %cst_54 = arith.constant 0.000000e+00 : f32
    %107 = vector.broadcast %cst_54 : f32 to vector<1x128xf32>
    %108 = arith.subf %107, %97 : vector<1x128xf32>
    %109 = arith.mulf %108, %106 : vector<1x128xf32>
    %110 = tpu.iota {dimensions = array<i32: 1>} : vector<1x128xi32>
    %c32_i32 = arith.constant 32 : i32
    %111 = vector.broadcast %c32_i32 : i32 to vector<1x128xi32>
    %112 = arith.cmpi slt, %110, %111 : vector<1x128xi32>
    %cst_55 = arith.constant 0.000000e+00 : f32
    %113 = vector.broadcast %cst_55 : f32 to vector<1x128xf32>
    %114 = arith.select %112, %106, %113 : vector<1x128xi1>, vector<1x128xf32>
    %c32_i32_56 = arith.constant 32 : i32
    %115 = vector.broadcast %c32_i32_56 : i32 to vector<1x128xi32>
    %116 = arith.cmpi slt, %110, %115 : vector<1x128xi32>
    %cst_57 = arith.constant 0.000000e+00 : f32
    %117 = vector.broadcast %cst_57 : f32 to vector<1x128xf32>
    %118 = arith.select %116, %109, %117 : vector<1x128xi1>, vector<1x128xf32>
    %c32_i32_58 = arith.constant 32 : i32
    %119 = tpu.dynamic_rotate %114 by %c32_i32_58 dim 1 : vector<1x128xf32>, i32 -> vector<1x128xf32>
    %120 = arith.addf %114, %119 : vector<1x128xf32>
    %c32_i32_59 = arith.constant 32 : i32
    %121 = tpu.dynamic_rotate %118 by %c32_i32_59 dim 1 : vector<1x128xf32>, i32 -> vector<1x128xf32>
    %122 = arith.addf %118, %121 : vector<1x128xf32>
    %c64_i32_60 = arith.constant 64 : i32
    %123 = tpu.dynamic_rotate %120 by %c64_i32_60 dim 1 : vector<1x128xf32>, i32 -> vector<1x128xf32>
    %124 = arith.addf %120, %123 : vector<1x128xf32>
    %c64_i32_61 = arith.constant 64 : i32
    %125 = tpu.dynamic_rotate %122 by %c64_i32_61 dim 1 : vector<1x128xf32>, i32 -> vector<1x128xf32>
    %126 = arith.addf %122, %125 : vector<1x128xf32>
    %127 = vector.broadcast %124 : vector<1x128xf32> to vector<8x128xf32>
    %128 = arith.mulf %82, %127 : vector<8x128xf32>
    %129 = vector.broadcast %126 : vector<1x128xf32> to vector<8x128xf32>
    %130 = arith.addf %128, %129 : vector<8x128xf32>
    %c1_62 = arith.constant 1 : index
    %c0_63 = arith.constant 0 : index
    %131 = vector.load %arg14[%c1_62, %c0_63] : memref<33x128xf32, #tpu.memory_space<vmem>>, vector<8x128xf32>
    tpu.vector_store %arg14[%c1_62, %c0_63], %130 {strides = array<i32>} : memref<33x128xf32, #tpu.memory_space<vmem>>, vector<8x128xf32>,
    %c0_64 = arith.constant 0 : index
    %c0_65 = arith.constant 0 : index
    %132 = tpu.strided_load %arg14[%c0_64, %c0_65] {strides = array<i32: 2, 1>} : memref<33x128xf32, #tpu.memory_space<vmem>>, vector<4x128xf32>
    %c1_66 = arith.constant 1 : index
    %c0_67 = arith.constant 0 : index
    %133 = tpu.strided_load %arg14[%c1_66, %c0_67] {strides = array<i32: 2, 1>} : memref<33x128xf32, #tpu.memory_space<vmem>>, vector<4x128xf32>
    %c2_68 = arith.constant 2 : index
    %c0_69 = arith.constant 0 : index
    %134 = tpu.strided_load %arg14[%c2_68, %c0_69] {strides = array<i32: 2, 1>} : memref<33x128xf32, #tpu.memory_space<vmem>>, vector<4x128xf32>
    %135 = tpu.iota {dimensions = array<i32: 0>} : vector<4x1xi32>
    %c2_i32 = arith.constant 2 : i32
    %c0_i32_70 = arith.constant 0 : i32
    %136 = arith.cmpi eq, %c2_i32, %c0_i32_70 : i32
    %c1_i32_71 = arith.constant 1 : i32
    %137 = arith.select %136, %c1_i32_71, %c2_i32 : i32
    %138 = vector.broadcast %137 : i32 to vector<4x1xi32>
    %139 = arith.remsi %135, %138 : vector<4x1xi32>
    %c0_i32_72 = arith.constant 0 : i32
    %140 = vector.broadcast %c0_i32_72 : i32 to vector<4x1xi32>
    %141 = arith.cmpi ne, %139, %140 : vector<4x1xi32>
    %c0_i32_73 = arith.constant 0 : i32
    %142 = vector.broadcast %c0_i32_73 : i32 to vector<4x1xi32>
    %143 = arith.cmpi slt, %139, %142 : vector<4x1xi32>
    %c0_i32_74 = arith.constant 0 : i32
    %144 = arith.cmpi slt, %137, %c0_i32_74 : i32
    %145 = vector.broadcast %144 : i1 to vector<4x1xi1>
    %146 = vector.broadcast %145 : vector<4x1xi1> to vector<4x1xi1>
    %147 = arith.xori %143, %146 : vector<4x1xi1>
    %148 = arith.andi %147, %141 : vector<4x1xi1>
    %149 = vector.broadcast %137 : i32 to vector<4x1xi32>
    %150 = arith.addi %139, %149 : vector<4x1xi32>
    %151 = arith.select %148, %150, %139 : vector<4x1xi1>, vector<4x1xi32>
    %c0_i32_75 = arith.constant 0 : i32
    %152 = vector.broadcast %c0_i32_75 : i32 to vector<4x1xi32>
    %153 = arith.cmpi eq, %151, %152 : vector<4x1xi32>
    %cst_76 = arith.constant 0.000000e+00 : f32
    %154 = vector.shape_cast %153 : vector<4x1xi1> to vector<4x1xi1>
    %155 = vector.broadcast %154 : vector<4x1xi1> to vector<4x128xi1>
    %156 = vector.broadcast %cst_76 : f32 to vector<4x128xf32>
    %157 = arith.select %155, %156, %132 : vector<4x128xi1>, vector<4x128xf32>
    %158 = tpu.concatenate %157, %133, %134 in 1 : vector<4x128xf32>, vector<4x128xf32>, vector<4x128xf32> -> vector<4x384xf32>
    %159 = arith.truncf %158 : vector<4x384xf32> to vector<4x384xbf16>
    %c0_77 = arith.constant 0 : index
    %c0_78 = arith.constant 0 : index
    %160 = vector.load %arg5[%c0_77, %c0_78] : memref<384x128xbf16, #tpu.memory_space<vmem>>, vector<384x128xbf16>
    %cst_79 = arith.constant dense<0.000000e+00> : vector<4x128xf32>
    %161 = tpu.matmul %159, %160, %cst_79 {dimension_numbers = #tpu.dot_dimension_numbers<[1], [0], [0], [1], [0, 0, 1, 1], [], []>} : vector<4x384xbf16>, vector<384x128xbf16>, vector<4x128xf32> -> vector<4x128xf32>
    %c0_80 = arith.constant 0 : index
    %c0_81 = arith.constant 0 : index
    %162 = vector.load %arg6[%c0_80, %c0_81] : memref<1x128xf32, #tpu.memory_space<vmem>>, vector<1x128xf32>
    %163 = vector.broadcast %162 : vector<1x128xf32> to vector<4x128xf32>
    %164 = arith.addf %161, %163 : vector<4x128xf32>
    %cst_82 = arith.constant 0.000000e+00 : f32
    %165 = vector.broadcast %cst_82 : f32 to vector<4x128xf32>
    %166 = arith.cmpf ogt, %164, %165 : vector<4x128xf32>
    %cst_83 = arith.constant 2.000000e-01 : f32
    %167 = vector.broadcast %cst_83 : f32 to vector<4x128xf32>
    %168 = arith.mulf %167, %164 : vector<4x128xf32>
    %169 = arith.select %166, %164, %168 : vector<4x128xi1>, vector<4x128xf32>
    %cst_84 = arith.constant dense<0.000000e+00> : vector<128xf32>
    %170 = vector.multi_reduction <add>, %169, %cst_84 [0] : vector<4x128xf32> to vector<128xf32>
    %171 = vector.shape_cast %170 : vector<128xf32> to vector<1x128xf32>
    %172 = arith.mulf %169, %169 : vector<4x128xf32>
    %cst_85 = arith.constant dense<0.000000e+00> : vector<128xf32>
    %173 = vector.multi_reduction <add>, %172, %cst_85 [0] : vector<4x128xf32> to vector<128xf32>
    %174 = vector.shape_cast %173 : vector<128xf32> to vector<1x128xf32>
    %c64_i32_86 = arith.constant 64 : i32
    %175 = tpu.dynamic_rotate %171 by %c64_i32_86 dim 1 : vector<1x128xf32>, i32 -> vector<1x128xf32>
    %176 = arith.addf %171, %175 : vector<1x128xf32>
    %c64_i32_87 = arith.constant 64 : i32
    %177 = tpu.dynamic_rotate %174 by %c64_i32_87 dim 1 : vector<1x128xf32>, i32 -> vector<1x128xf32>
    %178 = arith.addf %174, %177 : vector<1x128xf32>
    %cst_88 = arith.constant 1.250000e-01 : f32
    %179 = vector.broadcast %cst_88 : f32 to vector<1x128xf32>
    %180 = arith.mulf %176, %179 : vector<1x128xf32>
    %cst_89 = arith.constant 1.250000e-01 : f32
    %181 = vector.broadcast %cst_89 : f32 to vector<1x128xf32>
    %182 = arith.mulf %178, %181 : vector<1x128xf32>
    %183 = arith.mulf %180, %180 : vector<1x128xf32>
    %184 = arith.subf %182, %183 : vector<1x128xf32>
    %cst_90 = arith.constant 0.000000e+00 : f32
    %185 = vector.broadcast %cst_90 : f32 to vector<1x128xf32>
    %186 = arith.maximumf %184, %185 : vector<1x128xf32>
    %cst_91 = arith.constant 8.000000e-01 : f32
    %187 = vector.broadcast %cst_91 : f32 to vector<1x128xf32>
    %188 = arith.addf %186, %187 : vector<1x128xf32>
    %189 = math.rsqrt %188 : vector<1x128xf32>
    %cst_92 = arith.constant 0.000000e+00 : f32
    %190 = vector.broadcast %cst_92 : f32 to vector<1x128xf32>
    %191 = arith.subf %190, %180 : vector<1x128xf32>
    %192 = arith.mulf %191, %189 : vector<1x128xf32>
    %193 = tpu.iota {dimensions = array<i32: 1>} : vector<1x128xi32>
    %c64_i32_93 = arith.constant 64 : i32
    %194 = vector.broadcast %c64_i32_93 : i32 to vector<1x128xi32>
    %195 = arith.cmpi slt, %193, %194 : vector<1x128xi32>
    %cst_94 = arith.constant 0.000000e+00 : f32
    %196 = vector.broadcast %cst_94 : f32 to vector<1x128xf32>
    %197 = arith.select %195, %189, %196 : vector<1x128xi1>, vector<1x128xf32>
    %c64_i32_95 = arith.constant 64 : i32
    %198 = vector.broadcast %c64_i32_95 : i32 to vector<1x128xi32>
    %199 = arith.cmpi slt, %193, %198 : vector<1x128xi32>
    %cst_96 = arith.constant 0.000000e+00 : f32
    %200 = vector.broadcast %cst_96 : f32 to vector<1x128xf32>
    %201 = arith.select %199, %192, %200 : vector<1x128xi1>, vector<1x128xf32>
    %c64_i32_97 = arith.constant 64 : i32
    %202 = tpu.dynamic_rotate %197 by %c64_i32_97 dim 1 : vector<1x128xf32>, i32 -> vector<1x128xf32>
    %203 = arith.addf %197, %202 : vector<1x128xf32>
    %c64_i32_98 = arith.constant 64 : i32
    %204 = tpu.dynamic_rotate %201 by %c64_i32_98 dim 1 : vector<1x128xf32>, i32 -> vector<1x128xf32>
    %205 = arith.addf %201, %204 : vector<1x128xf32>
    %206 = vector.broadcast %203 : vector<1x128xf32> to vector<4x128xf32>
    %207 = arith.mulf %169, %206 : vector<4x128xf32>
    %208 = vector.broadcast %205 : vector<1x128xf32> to vector<4x128xf32>
    %209 = arith.addf %207, %208 : vector<4x128xf32>
    %c1_99 = arith.constant 1 : index
    %c0_100 = arith.constant 0 : index
    %210 = vector.load %arg15[%c1_99, %c0_100] : memref<33x128xf32, #tpu.memory_space<vmem>>, vector<4x128xf32>
    tpu.vector_store %arg15[%c1_99, %c0_100], %209 {strides = array<i32>} : memref<33x128xf32, #tpu.memory_space<vmem>>, vector<4x128xf32>,
    %c0_101 = arith.constant 0 : index
    %c0_102 = arith.constant 0 : index
    %211 = tpu.strided_load %arg15[%c0_101, %c0_102] {strides = array<i32: 2, 1>} : memref<33x128xf32, #tpu.memory_space<vmem>>, vector<2x128xf32>
    %c1_103 = arith.constant 1 : index
    %c0_104 = arith.constant 0 : index
    %212 = tpu.strided_load %arg15[%c1_103, %c0_104] {strides = array<i32: 2, 1>} : memref<33x128xf32, #tpu.memory_space<vmem>>, vector<2x128xf32>
    %c2_105 = arith.constant 2 : index
    %c0_106 = arith.constant 0 : index
    %213 = tpu.strided_load %arg15[%c2_105, %c0_106] {strides = array<i32: 2, 1>} : memref<33x128xf32, #tpu.memory_space<vmem>>, vector<2x128xf32>
    %214 = tpu.iota {dimensions = array<i32: 0>} : vector<2x1xi32>
    %c1_i32_107 = arith.constant 1 : i32
    %c0_i32_108 = arith.constant 0 : i32
    %215 = arith.cmpi eq, %c1_i32_107, %c0_i32_108 : i32
    %c1_i32_109 = arith.constant 1 : i32
    %216 = arith.select %215, %c1_i32_109, %c1_i32_107 : i32
    %217 = vector.broadcast %216 : i32 to vector<2x1xi32>
    %218 = arith.remsi %214, %217 : vector<2x1xi32>
    %c0_i32_110 = arith.constant 0 : i32
    %219 = vector.broadcast %c0_i32_110 : i32 to vector<2x1xi32>
    %220 = arith.cmpi ne, %218, %219 : vector<2x1xi32>
    %c0_i32_111 = arith.constant 0 : i32
    %221 = vector.broadcast %c0_i32_111 : i32 to vector<2x1xi32>
    %222 = arith.cmpi slt, %218, %221 : vector<2x1xi32>
    %c0_i32_112 = arith.constant 0 : i32
    %223 = arith.cmpi slt, %216, %c0_i32_112 : i32
    %224 = vector.broadcast %223 : i1 to vector<2x1xi1>
    %225 = vector.broadcast %224 : vector<2x1xi1> to vector<2x1xi1>
    %226 = arith.xori %222, %225 : vector<2x1xi1>
    %227 = arith.andi %226, %220 : vector<2x1xi1>
    %228 = vector.broadcast %216 : i32 to vector<2x1xi32>
    %229 = arith.addi %218, %228 : vector<2x1xi32>
    %230 = arith.select %227, %229, %218 : vector<2x1xi1>, vector<2x1xi32>
    %c0_i32_113 = arith.constant 0 : i32
    %231 = vector.broadcast %c0_i32_113 : i32 to vector<2x1xi32>
    %232 = arith.cmpi eq, %230, %231 : vector<2x1xi32>
    %cst_114 = arith.constant 0.000000e+00 : f32
    %233 = vector.shape_cast %232 : vector<2x1xi1> to vector<2x1xi1>
    %234 = vector.broadcast %233 : vector<2x1xi1> to vector<2x128xi1>
    %235 = vector.broadcast %cst_114 : f32 to vector<2x128xf32>
    %236 = arith.select %234, %235, %211 : vector<2x128xi1>, vector<2x128xf32>
    %237 = tpu.concatenate %236, %212, %213 in 1 : vector<2x128xf32>, vector<2x128xf32>, vector<2x128xf32> -> vector<2x384xf32>
    %238 = arith.truncf %237 : vector<2x384xf32> to vector<2x384xbf16>
    %c0_115 = arith.constant 0 : index
    %c0_116 = arith.constant 0 : index
    %239 = vector.load %arg7[%c0_115, %c0_116] : memref<384x128xbf16, #tpu.memory_space<vmem>>, vector<384x128xbf16>
    %cst_117 = arith.constant dense<0.000000e+00> : vector<2x128xf32>
    %240 = tpu.matmul %238, %239, %cst_117 {dimension_numbers = #tpu.dot_dimension_numbers<[1], [0], [0], [1], [0, 0, 1, 1], [], []>} : vector<2x384xbf16>, vector<384x128xbf16>, vector<2x128xf32> -> vector<2x128xf32>
    %c0_118 = arith.constant 0 : index
    %c0_119 = arith.constant 0 : index
    %241 = vector.load %arg8[%c0_118, %c0_119] : memref<1x128xf32, #tpu.memory_space<vmem>>, vector<1x128xf32>
    %242 = vector.broadcast %241 : vector<1x128xf32> to vector<2x128xf32>
    %243 = arith.addf %240, %242 : vector<2x128xf32>
    %cst_120 = arith.constant 0.000000e+00 : f32
    %244 = vector.broadcast %cst_120 : f32 to vector<2x128xf32>
    %245 = arith.cmpf ogt, %243, %244 : vector<2x128xf32>
    %cst_121 = arith.constant 2.000000e-01 : f32
    %246 = vector.broadcast %cst_121 : f32 to vector<2x128xf32>
    %247 = arith.mulf %246, %243 : vector<2x128xf32>
    %248 = arith.select %245, %243, %247 : vector<2x128xi1>, vector<2x128xf32>
    %cst_122 = arith.constant dense<0.000000e+00> : vector<128xf32>
    %249 = vector.multi_reduction <add>, %248, %cst_122 [0] : vector<2x128xf32> to vector<128xf32>
    %250 = vector.shape_cast %249 : vector<128xf32> to vector<1x128xf32>
    %251 = arith.mulf %248, %248 : vector<2x128xf32>
    %cst_123 = arith.constant dense<0.000000e+00> : vector<128xf32>
    %252 = vector.multi_reduction <add>, %251, %cst_123 [0] : vector<2x128xf32> to vector<128xf32>
    %253 = vector.shape_cast %252 : vector<128xf32> to vector<1x128xf32>
    %cst_124 = arith.constant 5.000000e-01 : f32
    %254 = vector.broadcast %cst_124 : f32 to vector<1x128xf32>
    %255 = arith.mulf %250, %254 : vector<1x128xf32>
    %cst_125 = arith.constant 5.000000e-01 : f32
    %256 = vector.broadcast %cst_125 : f32 to vector<1x128xf32>
    %257 = arith.mulf %253, %256 : vector<1x128xf32>
    %258 = arith.mulf %255, %255 : vector<1x128xf32>
    %259 = arith.subf %257, %258 : vector<1x128xf32>
    %cst_126 = arith.constant 0.000000e+00 : f32
    %260 = vector.broadcast %cst_126 : f32 to vector<1x128xf32>
    %261 = arith.maximumf %259, %260 : vector<1x128xf32>
    %cst_127 = arith.constant 8.000000e-01 : f32
    %262 = vector.broadcast %cst_127 : f32 to vector<1x128xf32>
    %263 = arith.addf %261, %262 : vector<1x128xf32>
    %264 = math.rsqrt %263 : vector<1x128xf32>
    %cst_128 = arith.constant 0.000000e+00 : f32
    %265 = vector.broadcast %cst_128 : f32 to vector<1x128xf32>
    %266 = arith.subf %265, %255 : vector<1x128xf32>
    %267 = arith.mulf %266, %264 : vector<1x128xf32>
    %268 = vector.broadcast %264 : vector<1x128xf32> to vector<2x128xf32>
    %269 = arith.mulf %248, %268 : vector<2x128xf32>
    %270 = vector.broadcast %267 : vector<1x128xf32> to vector<2x128xf32>
    %271 = arith.addf %269, %270 : vector<2x128xf32>
    %c1_129 = arith.constant 1 : index
    %c0_130 = arith.constant 0 : index
    %272 = vector.load %arg14[%c1_129, %c0_130] : memref<33x128xf32, #tpu.memory_space<vmem>>, vector<2x128xf32>
    tpu.vector_store %arg14[%c1_129, %c0_130], %271 {strides = array<i32>} : memref<33x128xf32, #tpu.memory_space<vmem>>, vector<2x128xf32>,
    %c1_131 = arith.constant 1 : index
    %c0_132 = arith.constant 0 : index
    %273 = vector.load %arg14[%c1_131, %c0_132] : memref<33x128xf32, #tpu.memory_space<vmem>>, vector<2x128xf32>
    %274 = arith.truncf %273 : vector<2x128xf32> to vector<2x128xbf16>
    %c0_133 = arith.constant 0 : index
    %c0_134 = arith.constant 0 : index
    %c0_135 = arith.constant 0 : index
    %275 = vector.load %arg9[%c0_133, %c0_134, %c0_135] : memref<1x128x128xbf16, #tpu.memory_space<vmem>>, vector<1x128x128xbf16>
    %276 = vector.shape_cast %275 : vector<1x128x128xbf16> to vector<128x128xbf16>
    %cst_136 = arith.constant dense<0.000000e+00> : vector<2x128xf32>
    %277 = tpu.matmul %274, %276, %cst_136 {dimension_numbers = #tpu.dot_dimension_numbers<[1], [0], [0], [1], [0, 0, 1, 1], [], []>} : vector<2x128xbf16>, vector<128x128xbf16>, vector<2x128xf32> -> vector<2x128xf32>
    %c0_137 = arith.constant 0 : index
    %c0_138 = arith.constant 0 : index
    %278 = vector.load %arg10[%c0_137, %c0_138] : memref<1x128xf32, #tpu.memory_space<vmem>>, vector<1x128xf32>
    %279 = vector.broadcast %278 : vector<1x128xf32> to vector<2x128xf32>
    %280 = arith.addf %277, %279 : vector<2x128xf32>
    %cst_139 = arith.constant 0.000000e+00 : f32
    %281 = vector.broadcast %cst_139 : f32 to vector<2x128xf32>
    %282 = arith.maximumf %280, %281 : vector<2x128xf32>
    %283 = arith.truncf %282 : vector<2x128xf32> to vector<2x128xbf16>
    %c0_140 = arith.constant 0 : index
    %c0_141 = arith.constant 0 : index
    %284 = vector.load %arg11[%c0_140, %c0_141] : memref<128x128xbf16, #tpu.memory_space<vmem>>, vector<128x128xbf16>
    %cst_142 = arith.constant dense<0.000000e+00> : vector<2x128xf32>
    %285 = tpu.matmul %283, %284, %cst_142 {dimension_numbers = #tpu.dot_dimension_numbers<[1], [0], [0], [1], [0, 0, 1, 1], [], []>} : vector<2x128xbf16>, vector<128x128xbf16>, vector<2x128xf32> -> vector<2x128xf32>
    %c0_143 = arith.constant 0 : index
    %c0_144 = arith.constant 0 : index
    %286 = vector.load %arg12[%c0_143, %c0_144] : memref<1x128xf32, #tpu.memory_space<vmem>>, vector<1x128xf32>
    %287 = vector.broadcast %286 : vector<1x128xf32> to vector<2x128xf32>
    %288 = arith.addf %285, %287 : vector<2x128xf32>
    %cst_145 = arith.constant dense<0xFF800000> : vector<2xf32>
    %289 = vector.multi_reduction <maximumf>, %288, %cst_145 [1] : vector<2x128xf32> to vector<2xf32>
    %290 = vector.shape_cast %289 : vector<2xf32> to vector<2x1xf32>
    %291 = vector.broadcast %290 : vector<2x1xf32> to vector<2x128xf32>
    %292 = arith.subf %288, %291 : vector<2x128xf32>
    %293 = math.exp %292 : vector<2x128xf32>
    %cst_146 = arith.constant dense<0.000000e+00> : vector<2xf32>
    %294 = vector.multi_reduction <add>, %293, %cst_146 [1] : vector<2x128xf32> to vector<2xf32>
    %295 = vector.shape_cast %294 : vector<2xf32> to vector<2x1xf32>
    %296 = vector.broadcast %295 : vector<2x1xf32> to vector<2x128xf32>
    %297 = arith.divf %293, %296 : vector<2x128xf32>
    %c0_147 = arith.constant 0 : index
    %c0_148 = arith.constant 0 : index
    %298 = vector.load %arg13[%c0_147, %c0_148] : memref<2x128xf32, #tpu.memory_space<vmem>>, vector<2x128xf32>
    tpu.vector_store %arg13[%c0_147, %c0_148], %297 {strides = array<i32>} : memref<2x128xf32, #tpu.memory_space<vmem>>, vector<2x128xf32>,
    return
  }
}

</mosaic_0001>

<bundles_post_ra>
// kernel: discriminator_forward.1
= control target key start
LH: loop header
LB: loop body
LE: loop exit
PB: predicated region body
PF: predicated region fallthrough
CT: control target
= control target key end

     0   :  { %v2106_v3 = vmov 0.0   ;;  %v66_v18 = vlaneseq  ;;  %s2594_s0 = inlined_call_operand.vmem [shape: f32[32,128], index: 0, kind: input, shape index: {}]   ;;  %s2595_s1 = inlined_call_operand.vmem [shape: bf16[384,128], index: 1, kind: input, shape index: {}]   ;;  %s2596_s2 = inlined_call_operand.vmem [shape: f32[1,128], index: 2, kind: input, shape index: {}]   ;;  %s2597_s3 = inlined_call_operand.vmem [shape: bf16[384,128], index: 3, kind: input, shape index: {}]   ;;  %s2598_s4 = inlined_call_operand.vmem [shape: f32[1,128], index: 4, kind: input, shape index: {}]   ;;  %s2599_s5 = inlined_call_operand.vmem [shape: bf16[384,128], index: 5, kind: input, shape index: {}]   ;;  %s2600_s6 = inlined_call_operand.vmem [shape: f32[1,128], index: 6, kind: input, shape index: {}]   ;;  %s2601_s7 = inlined_call_operand.vmem [shape: bf16[384,128], index: 7, kind: input, shape index: {}]   ;;  %s2602_s8 = inlined_call_operand.vmem [shape: f32[1,128], index: 8, kind: input, shape index: {}]   ;;  %s2603_s9 = inlined_call_operand.vmem [shape: bf16[1,128,128], index: 9, kind: input, shape index: {}]   ;;  %s2604_s10 = inlined_call_operand.vmem [shape: f32[1,128], index: 10, kind: input, shape index: {}]   ;;  %s2605_s11 = inlined_call_operand.vmem [shape: bf16[128,128], index: 11, kind: input, shape index: {}]   ;;  %s2606_s12 = inlined_call_operand.vmem [shape: f32[1,128], index: 12, kind: input, shape index: {}]   ;;  %s2607_s13 = inlined_call_operand.hbm [shape: f32[2,128], index: 13, kind: output, shape index: {}]  }
   0x1   :  { %v1949_v0 = vld [vmem:[%s2595_s1 + $0x38] sm:$0xff]  ;;  %45 = vst [vmem:[#allocation2] sm:$0x1] %v2106_v3  ;;  %v1948_v4 = vld [vmem:[%s2595_s1 + $0x30] sm:$0xff]  ;;  %v1947_v7 = vld [vmem:[%s2595_s1 + $0x28] sm:$0xff] }
   0x2   :  { %v1957_v1 = vld [vmem:[%s2595_s1 + $0x78] sm:$0xff]  ;;  %300 = vmatpush.bf16.msra.mxu0 %v1949_v0  ;;  %v1956_v5 = vld [vmem:[%s2595_s1 + $0x70] sm:$0xff]  ;;  %46 = vst [vmem:[#allocation3] sm:$0x1] %v2106_v3  ;;  %v1955_v8 = vld [vmem:[%s2595_s1 + $0x68] sm:$0xff] }
   0x3   :  { %v1965_v2 = vld [vmem:[%s2595_s1 + $0xb8] sm:$0xff]  ;;  %314 = vmatpush.bf16.msra.mxu1 %v1957_v1  ;;  %v1964_v6 = vld [vmem:[%s2595_s1 + $0xb0] sm:$0xff]  ;;  %v1963_v9 = vld [vmem:[%s2595_s1 + $0xa8] sm:$0xff] }
   0x4   :  { %328 = vmatpush.bf16.msra.mxu2 %v1965_v2  ;;  %v47_v10 = vld [vmem:[%s2594_s0] sm:$0xff]  ;;  %v48_v11 = vld [vmem:[%s2594_s0 + $0x8] sm:$0xff]  ;;  %v49_v12 = vld [vmem:[%s2594_s0 + $0x10] sm:$0xff] }
   0x5   :  { %v50_v13 = vld [vmem:[%s2594_s0 + $0x18] sm:$0xff]  ;;  %51 = vst [vmem:[#allocation2 + $0x1] sm:$0xff] %v47_v10  ;;  %v1946_v15 = vld [vmem:[%s2595_s1 + $0x20] sm:$0xff] }
   0x6   :  { %301 = vmatpush.bf16.msra.mxu0 %v1948_v4  ;;  %v1973_v14 = vld [vmem:[%s2597_s3 + $0x38] sm:$0xff]  ;;  %v1954_v16 = vld [vmem:[%s2595_s1 + $0x60] sm:$0xff]  ;;  %52 = vst [vmem:[#allocation2 + $0x9] sm:$0xff] %v48_v11 }
   0x7   :  { %315 = vmatpush.bf16.msra.mxu1 %v1956_v5  ;;  %v1962_v17 = vld [vmem:[%s2595_s1 + $0xa0] sm:$0xff]  ;;  %53 = vst [vmem:[#allocation2 + $0x11] sm:$0xff] %v49_v12  ;;  %570 = vmatpush.bf16.msra.mxu3 %v1973_v14 }
   0x8   :  { %329 = vmatpush.bf16.msra.mxu2 %v1964_v6  ;;  %54 = vst [vmem:[#allocation2 + $0x19] sm:$0xff] %v50_v13 }
   0xa   :  { %302 = vmatpush.bf16.msra.mxu0 %v1947_v7 }
   0xb   :  { %316 = vmatpush.bf16.msra.mxu1 %v1955_v8 }
   0xc   :  { %330 = vmatpush.bf16.msra.mxu2 %v1963_v9 }
   0xd   :  { %18 = vsyncpa [#allocation5], 0  ;;  %v1945_v19 = vld [vmem:[%s2595_s1 + $0x18] sm:$0xff]  ;;  %v2243_v22 = vshrl.u32 %v66_v18, 7  ;;  %v1944_v23 = vld [vmem:[%s2595_s1 + $0x10] sm:$0xff]  ;;  %s2108_s22 = smov 96  }
   0xe   :  { %303 = vmatpush.bf16.msra.mxu0 %v1946_v15  ;;  %v1953_v20 = vld [vmem:[%s2595_s1 + $0x58] sm:$0xff]  ;;  %v1952_v24 = vld [vmem:[%s2595_s1 + $0x50] sm:$0xff]  ;;  %v1943_v28 = vld [vmem:[%s2595_s1 + $0x8] sm:$0xff]  ;;  %s2109_s23 = smov 32   ;;  %vm938_vm15 = vcmask 1043456   ;;  %s1470_s20 = sshll.u32 %s2607_s13, 4  ;;  %s1471_s20 = int_to_ptr.hbm [resolvable:$true] %s1470_s20 }
   0xf   :  { %317 = vmatpush.bf16.msra.mxu1 %v1954_v16  ;;  %v1961_v21 = vld [vmem:[%s2595_s1 + $0x98] sm:$0xff]  ;;  %v1960_v25 = vld [vmem:[%s2595_s1 + $0x90] sm:$0xff]  ;;  %v68_v26 = vadd.s32 8, %v2243_v22  ;;  %v73_v27 = vand.u32 7, %v2243_v22  ;;  %v1951_v29 = vld [vmem:[%s2595_s1 + $0x48] sm:$0xff] }
  0x10   :  { %331 = vmatpush.bf16.msra.mxu2 %v1962_v17  ;;  %v1959_v30 = vld [vmem:[%s2595_s1 + $0x88] sm:$0xff]  ;;  %v1942_v32 = vld [vmem:[%s2595_s1] sm:$0xff]  ;;  %v57_v37 = vld [vmem:[#allocation2 + $0x10] ss:$2 sm:$0xff] }
  0x11   :  { %v80_v31 = vand.u32 7, %v68_v26  ;;  %v1950_v33 = vld [vmem:[%s2595_s1 + $0x40] sm:$0xff]  ;;  %vm2274_vm0 = vcmp.ne.s32.totalorder %v73_v27, 0  ;;  %v61_v39 = vld [vmem:[#allocation2 + $0x11] ss:$2 sm:$0xff]  ;;  %v1971_v50 = vld [vmem:[%s2597_s3 + $0x28] sm:$0xff] }
  0x12   :  { %304 = vmatpush.bf16.msra.mxu0 %v1945_v19  ;;  %v1958_v34 = vld [vmem:[%s2595_s1 + $0x80] sm:$0xff]  ;;  %v1981_v42 = vld [vmem:[%s2597_s3 + $0x78] sm:$0xff]  ;;  %v1972_v47 = vld [vmem:[%s2597_s3 + $0x30] sm:$0xff] }
  0x13   :  { %318 = vmatpush.bf16.msra.mxu1 %v1953_v20  ;;  %v55_v35 = vld [vmem:[#allocation2] ss:$2 sm:$0xff]  ;;  %v59_v38 = vld [vmem:[#allocation2 + $0x1] ss:$2 sm:$0xff]  ;;  %vm2054_vm1 = vcmp.ne.s32.totalorder %v80_v31, 0  ;;  %v1989_v43 = vld [vmem:[%s2597_s3 + $0xb8] sm:$0xff]  ;;  %571 = vmatpush.bf16.msra.mxu3 %v1972_v47 }
  0x14   :  { %332 = vmatpush.bf16.msra.mxu2 %v1961_v21  ;;  %v63_v40 = vld [vmem:[#allocation2 + $0x2] ss:$2 sm:$0xff]  ;;  %v65_v41 = vld [vmem:[#allocation2 + $0x12] ss:$2 sm:$0xff]  ;;  %v1578_v44 = vpack.c.bf16 %v57_v37, %v55_v35  ;;  %v102_v45 = vpack.c.bf16 %v61_v39, %v59_v38  ;;  %vm1577_vm2 = vmpackc.low %vm2054_vm1, %vm2274_vm0 }
  0x15   :  { %v103_v46 = vpack.c.bf16 %v65_v41, %v63_v40  ;;  %v1980_v48 = vld [vmem:[%s2597_s3 + $0x70] sm:$0xff]  ;;  %v1979_v51 = vld [vmem:[%s2597_s3 + $0x68] sm:$0xff]  ;;  %v1970_v53 = vld [vmem:[%s2597_s3 + $0x20] sm:$0xff] }
  0x16   :  { %305 = vmatpush.bf16.msra.mxu0 %v1944_v23  ;;  %v1988_v49 = vld [vmem:[%s2597_s3 + $0xb0] sm:$0xff]  ;;  %v1987_v52 = vld [vmem:[%s2597_s3 + $0xa8] sm:$0xff]  ;;  %v1978_v54 = vld [vmem:[%s2597_s3 + $0x60] sm:$0xff]  ;;  %v359_v23 = vand.u32 3, %v2243_v22 }
  0x17   :  { %319 = vmatpush.bf16.msra.mxu1 %v1952_v24  ;;  %572 = vmatpush.bf16.msra.mxu3 %v1971_v50  ;;  %v1986_v55 = vld [vmem:[%s2597_s3 + $0xa0] sm:$0xff]  ;;  %v1969_v56 = vld [vmem:[%s2597_s3 + $0x18] sm:$0xff]  ;;  %v1968_v59 = vld [vmem:[%s2597_s3 + $0x10] sm:$0xff] }
  0x18   :  { %333 = vmatpush.bf16.msra.mxu2 %v1960_v25  ;;  %v1977_v57 = vld [vmem:[%s2597_s3 + $0x58] sm:$0xff]  ;;  %v1976_v60 = vld [vmem:[%s2597_s3 + $0x50] sm:$0xff]  ;;  %v1967_v62 = vld [vmem:[%s2597_s3 + $0x8] sm:$0xff]  ;;  %vm2056_vm5 = vcmp.ne.s32.totalorder %v359_v23, 0 }
  0x19   :  { %v1985_v58 = vld [vmem:[%s2597_s3 + $0x98] sm:$0xff]  ;;  %v1984_v61 = vld [vmem:[%s2597_s3 + $0x90] sm:$0xff]  ;;  %v1975_v63 = vld [vmem:[%s2597_s3 + $0x48] sm:$0xff] }
  0x1a   :  { %306 = vmatpush.bf16.msra.mxu0 %v1943_v28  ;;  %v1983_v0 = vld [vmem:[%s2597_s3 + $0x88] sm:$0xff]  ;;  %v1966_v1 = vld [vmem:[%s2597_s3] sm:$0xff]  ;;  %vm1678_vm6 = vmpackc.low %vm2056_vm5, %vm2056_vm5  ;;  %vm1235_vm5 = vcmask 1041408  }
  0x1b   :  { %320 = vmatpush.bf16.msra.mxu1 %v1951_v29  ;;  %573 = vmatpush.bf16.msra.mxu3 %v1970_v53  ;;  %v1974_v2 = vld [vmem:[%s2597_s3 + $0x40] sm:$0xff]  ;;  %v2012_v23 = vld [vmem:[%s2599_s5 + $0xb0] sm:$0xff] }
  0x1c   :  { %334 = vmatpush.bf16.msra.mxu2 %v1959_v30  ;;  %v1982_v3 = vld [vmem:[%s2597_s3 + $0x80] sm:$0xff] }
  0x1d   :  { %v2064_v4 = vld [vmem:[%s2596_s2] ss:$0 sm:$0xff] }
  0x1e   :  { %307 = vmatpush.bf16.msra.mxu0 %v1942_v32  ;;  %v2065_v32 = vld [vmem:[%s2598_s4] ss:$0 sm:$0xff]  ;;  %s2107_s4 = smov 64  }
  0x1f   :  { %321 = vmatpush.bf16.msra.mxu1 %v1950_v33  ;;  %574 = vmatpush.bf16.msra.mxu3 %v1969_v56 }
  0x20   :  { %335 = vmatpush.bf16.msra.mxu2 %v1958_v34 }
  0x21   :  { %1579 = vmatmul.msk.bf16.vlgmr.msra.gmra.mxu0 %vm1577_vm2, %v1578_v44 }
  0x22   :  { %583 = vmatpush.bf16.msrb.mxu0 %v1981_v42  ;;  %322 = vmatmul.bf16.vlgmr.msra.gmra.mxu1 %v102_v45 }
  0x23   :  { %596 = vmatpush.bf16.msrb.mxu1 %v1989_v43  ;;  %336 = vmatmul.bf16.vlgmr.msra.gmra.mxu2 %v103_v46 }
  0x24   :  { %575 = vmatpush.bf16.msra.mxu3 %v1968_v59 }
  0x26   :  { %584 = vmatpush.bf16.msrb.mxu0 %v1980_v48 }
  0x27   :  { %597 = vmatpush.bf16.msrb.mxu1 %v1988_v49 }
  0x28   :  { %576 = vmatpush.bf16.msra.mxu3 %v1967_v62 }
  0x2a   :  { %585 = vmatpush.bf16.msrb.mxu0 %v1979_v51 }
  0x2b   :  { %598 = vmatpush.bf16.msrb.mxu1 %v1987_v52 }
  0x2c   :  { %577 = vmatpush.bf16.msra.mxu3 %v1966_v1 }
  0x2e   :  { %586 = vmatpush.bf16.msrb.mxu0 %v1978_v54 }
  0x2f   :  { %599 = vmatpush.bf16.msrb.mxu1 %v1986_v55 }
  0x32   :  { %587 = vmatpush.bf16.msrb.mxu0 %v1977_v57 }
  0x33   :  { %600 = vmatpush.bf16.msrb.mxu1 %v1985_v58 }
  0x36   :  { %588 = vmatpush.bf16.msrb.mxu0 %v1976_v60 }
  0x37   :  { %601 = vmatpush.bf16.msrb.mxu1 %v1984_v61 }
  0x3a   :  { %589 = vmatpush.bf16.msrb.mxu0 %v1975_v63 }
  0x3b   :  { %602 = vmatpush.bf16.msrb.mxu1 %v1983_v0 }
  0x3e   :  { %590 = vmatpush.bf16.msrb.mxu0 %v1974_v2 }
  0x3f   :  { %603 = vmatpush.bf16.msrb.mxu1 %v1982_v3 }
  0x9e   :  { %v309_v5 = vpop.f32.mrf.mxu0 }
  0x9f   :  { %v310_v6 = vadd.f32 %v2064_v4, %v309_v5  ;;  %v323_v7 = vpop.f32.mrf.mxu1 }
  0xa1   :  { %v324_v8 = vadd.f32 %v323_v7, %v310_v6 }
  0xa6   :  { %v337_v9 = vpop.f32.mrf.mxu2  ;;  %v311_v11 = vpop.f32.mrf.mxu0 }
  0xa7   :  { %v338_v10 = vadd.f32 %v337_v9, %v324_v8  ;;  %v312_v13 = vadd.f32 %v2064_v4, %v311_v11  ;;  %v325_v15 = vpop.f32.mrf.mxu1  ;;  %v2365_v9 = vand.u32 127, %v66_v18  ;;  %v1997_v18 = vld [vmem:[%s2599_s5 + $0x38] sm:$0xff] }
  0xa8   :  { %896 = vmatpush.bf16.msrb.mxu2 %v1997_v18 }
  0xa9   :  { %vm342_vm3 = vcmp.gt.f32.partialorder %v338_v10, 0.0  ;;  %v344_v12 = vmul.f32 0.2, %v338_v10  ;;  %v326_v16 = vadd.f32 %v325_v15, %v312_v13  ;;  %vm657_vm10 = vcmp.lt.s32.totalorder %v2365_v9, 32 }
  0xaa   :  { %vm978_vm2 = vcmp.lt.s32.totalorder %v2365_v9, 64  ;;  %v2037_v9 = vld [vmem:[%s2601_s7 + $0xb8] sm:$0xff] }
  0xab   :  { %v346_v14 = vsel %vm342_vm3, %v338_v10, %v344_v12 }
  0xac   :  { %348 = vst [vmem:[#allocation3 + $0x1] sm:$0xff] %v346_v14 }
  0xae   :  { %v339_v17 = vpop.f32.mrf.mxu2 }
  0xaf   :  { %v340_v19 = vadd.f32 %v339_v17, %v326_v16  ;;  %v2005_v17 = vld [vmem:[%s2599_s5 + $0x78] sm:$0xff] }
  0xb0   :  { %909 = vmatpush.bf16.msrb.mxu3 %v2005_v17 }
  0xb1   :  { %vm343_vm4 = vcmp.gt.f32.partialorder %v340_v19, 0.0  ;;  %v345_v20 = vmul.f32 0.2, %v340_v19 }
  0xb3   :  { %v347_v21 = vsel %vm343_vm4, %v340_v19, %v345_v20  ;;  %v2013_v19 = vld [vmem:[%s2599_s5 + $0xb8] sm:$0xff]  ;;  %v1996_v20 = vld [vmem:[%s2599_s5 + $0x30] sm:$0xff] }
  0xb4   :  { %349 = vst [vmem:[#allocation3 + $0x9] sm:$0xff] %v347_v21  ;;  %v2004_v21 = vld [vmem:[%s2599_s5 + $0x70] sm:$0xff]  ;;  %922 = vmatpush.bf16.msra.mxu0 %v2013_v19  ;;  %897 = vmatpush.bf16.msrb.mxu2 %v1996_v20 }
  0xb5   :  { %910 = vmatpush.bf16.msrb.mxu3 %v2004_v21 }
  0xb8   :  { %923 = vmatpush.bf16.msra.mxu0 %v2012_v23 }
  0xbb   :  { %v350_v24 = vld [vmem:[#allocation3] ss:$2 sm:$0xff]  ;;  %v352_v25 = vld [vmem:[#allocation3 + $0x1] ss:$2 sm:$0xff] }
  0xbc   :  { %v354_v26 = vld [vmem:[#allocation3 + $0x2] ss:$2 sm:$0xff]  ;;  %v1679_v27 = vpack.c.bf16 %v350_v24, %v350_v24  ;;  %v372_v28 = vpack.c.bf16 %v352_v25, %v352_v25 }
  0xbd   :  { %v373_v29 = vpack.c.bf16 %v354_v26, %v354_v26 }
  0xbe   :  { %1680 = vmatmul.msk.bf16.vlgmr.msra.gmra.mxu3 %vm1678_vm6, %v1679_v27  ;;  %591 = vmatmul.bf16.vlgmr.msrb.gmra.mxu0 %v372_v28  ;;  %v1995_v28 = vld [vmem:[%s2599_s5 + $0x28] sm:$0xff] }
  0xbf   :  { %604 = vmatmul.bf16.vlgmr.msrb.gmra.mxu1 %v373_v29  ;;  %v2003_v29 = vld [vmem:[%s2599_s5 + $0x68] sm:$0xff]  ;;  %898 = vmatpush.bf16.msrb.mxu2 %v1995_v28 }
  0xc0   :  { %911 = vmatpush.bf16.msrb.mxu3 %v2003_v29 }
 0x13b   :  { %v592_v30 = vpop.f32.mrf.mxu0 }
 0x13c   :  { %v605_v31 = vpop.f32.mrf.mxu1 }
 0x141   :  { %v579_v33 = vpop.f32.mrf.mxu3 }
 0x142   :  { %v580_v34 = vadd.f32 %v2065_v32, %v579_v33  ;;  %v2002_v32 = vld [vmem:[%s2599_s5 + $0x60] sm:$0xff] }
 0x143   :  { %v594_v35 = vpop.f32.mrf.mxu0  ;;  %v2010_v33 = vld [vmem:[%s2599_s5 + $0xa0] sm:$0xff]  ;;  %912 = vmatpush.bf16.msrb.mxu3 %v2002_v32 }
 0x144   :  { %v593_v36 = vadd.f32 %v592_v30, %v580_v34  ;;  %v607_v37 = vpop.f32.mrf.mxu1  ;;  %v2011_v30 = vld [vmem:[%s2599_s5 + $0xa8] sm:$0xff]  ;;  %v1993_v34 = vld [vmem:[%s2599_s5 + $0x18] sm:$0xff] }
 0x145   :  { %924 = vmatpush.bf16.msra.mxu0 %v2011_v30  ;;  %v2001_v35 = vld [vmem:[%s2599_s5 + $0x58] sm:$0xff]  ;;  %v1992_v37 = vld [vmem:[%s2599_s5 + $0x10] sm:$0xff] }
 0x146   :  { %v606_v38 = vadd.f32 %v605_v31, %v593_v36  ;;  %v1994_v31 = vld [vmem:[%s2599_s5 + $0x20] sm:$0xff]  ;;  %v2009_v36 = vld [vmem:[%s2599_s5 + $0x98] sm:$0xff] }
 0x147   :  { %899 = vmatpush.bf16.msrb.mxu2 %v1994_v31  ;;  %913 = vmatpush.bf16.msrb.mxu3 %v2001_v35 }
 0x148   :  { %vm609_vm7 = vcmp.gt.f32.partialorder %v606_v38, 0.0  ;;  %v610_v39 = vmul.f32 0.2, %v606_v38 }
 0x149   :  { %v581_v40 = vpop.f32.mrf.mxu3  ;;  %925 = vmatpush.bf16.msra.mxu0 %v2010_v33 }
 0x14a   :  { %v2356_v41 = vsel %vm609_vm7, %v606_v38, %v610_v39  ;;  %v2000_v38 = vld [vmem:[%s2599_s5 + $0x50] sm:$0xff]  ;;  %v1991_v40 = vld [vmem:[%s2599_s5 + $0x8] sm:$0xff] }
 0x14b   :  { %v612_v42 = vrot.slane %v2356_v41, 4  ;;  %v618_v43 = vmul.f32 %v2356_v41, %v2356_v41  ;;  %900 = vmatpush.bf16.msrb.mxu2 %v1993_v34  ;;  %v2008_v39 = vld [vmem:[%s2599_s5 + $0x90] sm:$0xff]  ;;  %914 = vmatpush.bf16.msrb.mxu3 %v2000_v38 }
 0x14d   :  { %v613_v44 = vadd.f32 %v612_v42, %v2356_v41  ;;  %v619_v45 = vrot.slane %v618_v43, 4  ;;  %926 = vmatpush.bf16.msra.mxu0 %v2009_v36  ;;  %v1999_v42 = vld [vmem:[%s2599_s5 + $0x48] sm:$0xff] }
 0x14f   :  { %v614_v46 = vrot.slane %v613_v44, 2  ;;  %v620_v47 = vadd.f32 %v619_v45, %v618_v43  ;;  %901 = vmatpush.bf16.msrb.mxu2 %v1992_v37  ;;  %v2007_v43 = vld [vmem:[%s2599_s5 + $0x88] sm:$0xff]  ;;  %915 = vmatpush.bf16.msrb.mxu3 %v1999_v42  ;;  %v1998_v45 = vld [vmem:[%s2599_s5 + $0x40] sm:$0xff] }
 0x151   :  { %v615_v48 = vadd.f32 %v614_v46, %v613_v44  ;;  %v621_v49 = vrot.slane %v620_v47, 2  ;;  %927 = vmatpush.bf16.msra.mxu0 %v2008_v39  ;;  %v1990_v44 = vld [vmem:[%s2599_s5] sm:$0xff] }
 0x152   :  { %v2006_v46 = vld [vmem:[%s2599_s5 + $0x80] sm:$0xff] }
 0x153   :  { %v616_v50 = vrot.slane %v615_v48, 1  ;;  %v622_v52 = vadd.f32 %v621_v49, %v620_v47  ;;  %902 = vmatpush.bf16.msrb.mxu2 %v1991_v40  ;;  %916 = vmatpush.bf16.msrb.mxu3 %v1998_v45 }
 0x155   :  { %v617_v51 = vadd.f32 %v616_v50, %v615_v48  ;;  %v623_v53 = vrot.slane %v622_v52, 1  ;;  %928 = vmatpush.bf16.msra.mxu0 %v2007_v43 }
 0x157   :  { %625 = vrot.lane.b32.xlu0 %v617_v51, %s2107_s4  ;;  %v624_v54 = vadd.f32 %v623_v53, %v622_v52  ;;  %903 = vmatpush.bf16.msrb.mxu2 %v1990_v44 }
 0x158   :  { %1219 = vmatpush.bf16.msra.mxu3 %v2037_v9 }
 0x159   :  { %929 = vmatpush.bf16.msra.mxu0 %v2006_v46 }
 0x15f   :  { %628 = vrot.lane.b32.xlu0 %v624_v54, %s2107_s4 }
 0x1c9   :  { %v626_v55 = vpop.permute.xlu0 %625 }
 0x1ca   :  { %v627_v56 = vadd.f32 %v626_v55, %v617_v51  ;;  %v685_v55 = vand.u32 1, %v2243_v22 }
 0x1cc   :  { %631 = vrot.lane.b32.xlu1 %v627_v56, %s2108_s22  ;;  %vm2057_vm12 = vcmp.ne.s32.totalorder %v685_v55, 0  ;;  %v2018_v55 = vld [vmem:[%s2601_s7 + $0x20] sm:$0xff] }
 0x1cd   :  { %vm1779_vm13 = vmpackc.low %vm2057_vm12, %vm2057_vm12 }
 0x1d1   :  { %v629_v57 = vpop.permute.xlu0 %628 }
 0x1d2   :  { %v630_v58 = vadd.f32 %v629_v57, %v624_v54 }
 0x1d4   :  { %634 = vrot.lane.b32.xlu1 %v630_v58, %s2108_s22 }
 0x23e   :  { %v632_v59 = vpop.permute.xlu1 %631 }
 0x23f   :  { %v633_v60 = vadd.f32 %v632_v59, %v627_v56 }
 0x241   :  { %v637_v61 = vmul.f32 0.03125, %v633_v60 }
 0x243   :  { %v639_v0 = vmul.f32 %v637_v61, %v637_v61  ;;  %v653_v14 = vsub.f32 0.0, %v637_v61 }
 0x246   :  { %v635_v62 = vpop.permute.xlu1 %634 }
 0x247   :  { %v636_v63 = vadd.f32 %v635_v62, %v630_v58 }
 0x249   :  { %v638_v1 = vmul.f32 0.03125, %v636_v63 }
 0x24b   :  { %v640_v2 = vsub.f32 %v638_v1, %v639_v0 }
 0x24d   :  { %v641_v3 = vmax.f32 %v640_v2, 0.0 }
 0x24f   :  { %v642_v4 = vadd.f32 0.8, %v641_v3 }
 0x251   :  { %2070 = vrsqrt.f32 %v642_v4  ;;  %vm649_vm9 = vweird.f32 %v642_v4 }
 0x257   :  { %v2071_v5 = vpop.eup %2070 }
 0x258   :  { %v644_v6 = vmul.f32 %v2071_v5, %v642_v4  ;;  %vm650_vm8 = vweird.f32 %v2071_v5 }
 0x259   :  { %vm651_vm11 = vmor %vm649_vm9, %vm650_vm8 }
 0x25a   :  { %v645_v7 = vmul.f32 %v2071_v5, %v644_v6 }
 0x25c   :  { %v646_v8 = vmul.f32 0.5, %v645_v7 }
 0x25e   :  { %v647_v10 = vsub.f32 1.5, %v646_v8 }
 0x260   :  { %v648_v11 = vmul.f32 %v2071_v5, %v647_v10 }
 0x262   :  { %v652_v12 = vsel %vm651_vm11, %v2071_v5, %v648_v11 }
 0x263   :  { %v658_v13 = vsel %vm657_vm10, %v652_v12, 0.0  ;;  %v654_v15 = vmul.f32 %v653_v14, %v652_v12 }
 0x264   :  { %660 = vrot.lane.b32.xlu2 %v658_v13, %s2109_s23 }
 0x265   :  { %v659_v16 = vsel %vm657_vm10, %v654_v15, 0.0 }
 0x26c   :  { %663 = vrot.lane.b32.xlu2 %v659_v16, %s2109_s23 }
 0x2be   :  { %v661_v24 = vpop.permute.xlu2 %660 }
 0x2bf   :  { %v662_v25 = vadd.f32 %v661_v24, %v658_v13 }
 0x2c1   :  { %666 = vrot.lane.b32.xlu0 %v662_v25, %s2107_s4 }
 0x2c6   :  { %v664_v26 = vpop.permute.xlu2 %663 }
 0x2c7   :  { %v665_v27 = vadd.f32 %v664_v26, %v659_v16 }
 0x2c9   :  { %669 = vrot.lane.b32.xlu1 %v665_v27, %s2107_s4 }
 0x333   :  { %v667_v47 = vpop.permute.xlu0 %666 }
 0x334   :  { %v668_v48 = vadd.f32 %v667_v47, %v662_v25  ;;  %v2021_v47 = vld [vmem:[%s2601_s7 + $0x38] sm:$0xff] }
 0x335   :  { %1193 = vmatpush.bf16.msra.mxu1 %v2021_v47 }
 0x336   :  { %v672_v49 = vperm.slane %v668_v48, 0  ;;  %v2029_v48 = vld [vmem:[%s2601_s7 + $0x78] sm:$0xff] }
 0x337   :  { %1206 = vmatpush.bf16.msra.mxu2 %v2029_v48 }
 0x338   :  { %v673_v52 = vmul.f32 %v672_v49, %v2356_v41  ;;  %v2066_v41 = vld [vmem:[%s2600_s6] ss:$0 sm:$0xff]  ;;  %v2020_v49 = vld [vmem:[%s2601_s7 + $0x30] sm:$0xff] }
 0x339   :  { %1194 = vmatpush.bf16.msra.mxu1 %v2020_v49 }
 0x33b   :  { %v670_v50 = vpop.permute.xlu1 %669 }
 0x33c   :  { %v671_v51 = vadd.f32 %v670_v50, %v665_v27  ;;  %v2028_v50 = vld [vmem:[%s2601_s7 + $0x70] sm:$0xff] }
 0x33d   :  { %1207 = vmatpush.bf16.msra.mxu2 %v2028_v50  ;;  %v2040_v50 = vld [vmem:[%s2603_s9 + $0x10] sm:$0xff] }
 0x33e   :  { %v674_v53 = vperm.slane %v671_v51, 0  ;;  %v2036_v51 = vld [vmem:[%s2601_s7 + $0xb0] sm:$0xff] }
 0x33f   :  { %1220 = vmatpush.bf16.msra.mxu3 %v2036_v51 }
 0x340   :  { %v675_v54 = vadd.f32 %v674_v53, %v673_v52  ;;  %v2019_v52 = vld [vmem:[%s2601_s7 + $0x28] sm:$0xff] }
 0x341   :  { %v2027_v53 = vld [vmem:[%s2601_s7 + $0x68] sm:$0xff]  ;;  %1195 = vmatpush.bf16.msra.mxu1 %v2019_v52 }
 0x342   :  { %676 = vst [vmem:[#allocation2 + $0x1] sm:$0xff] %v675_v54  ;;  %v2035_v54 = vld [vmem:[%s2601_s7 + $0xa8] sm:$0xff]  ;;  %1208 = vmatpush.bf16.msra.mxu2 %v2027_v53 }
 0x343   :  { %1221 = vmatpush.bf16.msra.mxu3 %v2035_v54  ;;  %v2039_v53 = vld [vmem:[%s2603_s9 + $0x8] sm:$0xff] }
 0x345   :  { %1196 = vmatpush.bf16.msra.mxu1 %v2018_v55 }
 0x349   :  { %v677_v56 = vld [vmem:[#allocation2] ss:$2 sm:$0xf]  ;;  %v679_v57 = vld [vmem:[#allocation2 + $0x1] ss:$2 sm:$0xf] }
 0x34a   :  { %v1780_v58 = vpack.c.bf16 %v677_v56, %v677_v56  ;;  %v698_v59 = vpack.c.bf16 %v679_v57, %v679_v57  ;;  %v680_v60 = vld [vmem:[#allocation2 + $0x2] ss:$2 sm:$0xf] }
 0x34b   :  { %v699_v61 = vpack.c.bf16 %v680_v60, %v680_v60  ;;  %v2026_v56 = vld [vmem:[%s2601_s7 + $0x60] sm:$0xff]  ;;  %v2025_v60 = vld [vmem:[%s2601_s7 + $0x58] sm:$0xff] }
 0x34c   :  { %1781 = vmatmul.msk.bf16.vlgmr.msrb.gmra.mxu2 %vm1779_vm13, %v1780_v58  ;;  %917 = vmatmul.bf16.vlgmr.msrb.gmra.mxu3 %v698_v59  ;;  %v2034_v57 = vld [vmem:[%s2601_s7 + $0xa0] sm:$0xff]  ;;  %v2017_v58 = vld [vmem:[%s2601_s7 + $0x18] sm:$0xff]  ;;  %v2016_v59 = vld [vmem:[%s2601_s7 + $0x10] sm:$0xff] }
 0x34d   :  { %930 = vmatmul.bf16.vlgmr.msra.gmra.mxu0 %v699_v61  ;;  %1209 = vmatpush.bf16.msra.mxu2 %v2026_v56  ;;  %v2033_v61 = vld [vmem:[%s2601_s7 + $0x98] sm:$0xff] }
 0x34e   :  { %1222 = vmatpush.bf16.msra.mxu3 %v2034_v57  ;;  %1197 = vmatpush.bf16.msra.mxu1 %v2017_v58  ;;  %v2038_v57 = vld [vmem:[%s2603_s9] sm:$0xff] }
 0x351   :  { %1210 = vmatpush.bf16.msra.mxu2 %v2025_v60  ;;  %v2053_v60 = vld [vmem:[%s2605_s11 + $0x38] sm:$0xff] }
 0x352   :  { %1198 = vmatpush.bf16.msra.mxu1 %v2016_v59  ;;  %1223 = vmatpush.bf16.msra.mxu3 %v2033_v61  ;;  %v2052_v61 = vld [vmem:[%s2605_s11 + $0x30] sm:$0xff] }
 0x3ca   :  { %v931_v62 = vpop.f32.mrf.mxu0 }
 0x3cf   :  { %v905_v63 = vpop.f32.mrf.mxu2  ;;  %v918_v0 = vpop.f32.mrf.mxu3 }
 0x3d0   :  { %v906_v1 = vadd.f32 %v2066_v41, %v905_v63  ;;  %v2024_v41 = vld [vmem:[%s2601_s7 + $0x50] sm:$0xff] }
 0x3d1   :  { %v2032_v63 = vld [vmem:[%s2601_s7 + $0x90] sm:$0xff]  ;;  %1211 = vmatpush.bf16.msra.mxu2 %v2024_v41  ;;  %v2051_v41 = vld [vmem:[%s2605_s11 + $0x28] sm:$0xff] }
 0x3d2   :  { %v919_v22 = vadd.f32 %v918_v0, %v906_v1  ;;  %v933_v2 = vpop.f32.mrf.mxu0  ;;  %v2014_v0 = vld [vmem:[%s2601_s7] sm:$0xff]  ;;  %v2023_v1 = vld [vmem:[%s2601_s7 + $0x48] sm:$0xff]  ;;  %1224 = vmatpush.bf16.msra.mxu3 %v2032_v63 }
 0x3d3   :  { %v2022_v2 = vld [vmem:[%s2601_s7 + $0x40] sm:$0xff] }
 0x3d4   :  { %v932_v3 = vadd.f32 %v931_v62, %v919_v22  ;;  %v2015_v62 = vld [vmem:[%s2601_s7 + $0x8] sm:$0xff] }
 0x3d5   :  { %1199 = vmatpush.bf16.msra.mxu1 %v2015_v62  ;;  %v2031_v22 = vld [vmem:[%s2601_s7 + $0x88] sm:$0xff]  ;;  %1212 = vmatpush.bf16.msra.mxu2 %v2023_v1  ;;  %v2050_v1 = vld [vmem:[%s2605_s11 + $0x20] sm:$0xff] }
 0x3d6   :  { %vm935_vm14 = vcmp.gt.f32.partialorder %v932_v3, 0.0  ;;  %v936_v4 = vmul.f32 0.2, %v932_v3  ;;  %1225 = vmatpush.bf16.msra.mxu3 %v2031_v22 }
 0x3d7   :  { %v907_v5 = vpop.f32.mrf.mxu2  ;;  %v920_v6 = vpop.f32.mrf.mxu3 }
 0x3d8   :  { %v2447_v7 = vsel %vm935_vm14, %v932_v3, %v936_v4  ;;  %v2030_v3 = vld [vmem:[%s2601_s7 + $0x80] sm:$0xff]  ;;  %v2110_v4 = vmov 0.0|0.0  }
 0x3d9   :  { %v946_v8 = vmul.f32 %v2447_v7, %v2447_v7  ;;  %v939_v10 = vsel %vm938_vm15, %v2447_v7, 0.0  ;;  %1200 = vmatpush.bf16.msra.mxu1 %v2014_v0  ;;  %1213 = vmatpush.bf16.msra.mxu2 %v2022_v2 }
 0x3da   :  { %v940_v11 = vrot.slane %v939_v10, 4  ;;  %1226 = vmatpush.bf16.msra.mxu3 %v2030_v3  ;;  %v2049_v3 = vld [vmem:[%s2605_s11 + $0x18] sm:$0xff] }
 0x3db   :  { %v947_v12 = vsel %vm938_vm15, %v946_v8, 0.0 }
 0x3dc   :  { %v941_v13 = vadd.f32 %v940_v11, %v939_v10  ;;  %v948_v14 = vrot.slane %v947_v12, 4  ;;  %1201 = vmatmul.bf16.vlgmr.msra.gmra.mxu1 %v2110_v4 }
 0x3dd   :  { %1425 = vmatpush.bf16.msrb.mxu1 %v2053_v60 }
 0x3de   :  { %v942_v15 = vrot.slane %v941_v13, 2  ;;  %v949_v16 = vadd.f32 %v948_v14, %v947_v12 }
 0x3e0   :  { %v943_v18 = vadd.f32 %v942_v15, %v941_v13  ;;  %v950_v17 = vrot.slane %v949_v16, 2 }
 0x3e1   :  { %1426 = vmatpush.bf16.msrb.mxu1 %v2052_v61 }
 0x3e2   :  { %v944_v19 = vrot.slane %v943_v18, 1  ;;  %v951_v20 = vadd.f32 %v950_v17, %v949_v16 }
 0x3e4   :  { %v945_v21 = vadd.f32 %v944_v19, %v943_v18  ;;  %v952_v23 = vrot.slane %v951_v20, 1 }
 0x3e5   :  { %1427 = vmatpush.bf16.msrb.mxu1 %v2051_v41 }
 0x3e6   :  { %954 = vrot.lane.b32.xlu2 %v945_v21, %s2107_s4  ;;  %v953_v24 = vadd.f32 %v952_v23, %v951_v20 }
 0x3e8   :  { %957 = vrot.lane.b32.xlu0 %v953_v24, %s2107_s4 }
 0x3e9   :  { %1428 = vmatpush.bf16.msrb.mxu1 %v2050_v1 }
 0x3ed   :  { %1429 = vmatpush.bf16.msrb.mxu1 %v2049_v3 }
 0x440   :  { %v955_v25 = vpop.permute.xlu2 %954 }
 0x441   :  { %v956_v26 = vadd.f32 %v955_v25, %v945_v21  ;;  %v2067_v21 = vld [vmem:[%s2602_s8] ss:$0 sm:$0xff] }
 0x443   :  { %v960_v27 = vmul.f32 0.125, %v956_v26 }
 0x445   :  { %v962_v30 = vmul.f32 %v960_v27, %v960_v27  ;;  %v976_v42 = vsub.f32 0.0, %v960_v27 }
 0x459   :  { %v1202_v19 = vpop.f32.mrf.mxu1 }
 0x45a   :  { %v958_v28 = vpop.permute.xlu0 %957  ;;  %v1203_v23 = vadd.f32 %v2067_v21, %v1202_v19 }
 0x45b   :  { %v959_v29 = vadd.f32 %v958_v28, %v953_v24  ;;  %v2045_v24 = vld [vmem:[%s2603_s9 + $0x38] sm:$0xff]  ;;  %v2044_v28 = vld [vmem:[%s2603_s9 + $0x30] sm:$0xff] }
 0x45c   :  { %1342 = vmatpush.bf16.msrb.mxu0 %v2045_v24  ;;  %v2069_v24 = vld [vmem:[%s2606_s12] ss:$0 sm:$0xff] }
 0x45d   :  { %v961_v31 = vmul.f32 0.125, %v959_v29 }
 0x45f   :  { %v963_v32 = vsub.f32 %v961_v31, %v962_v30  ;;  %v2043_v31 = vld [vmem:[%s2603_s9 + $0x28] sm:$0xff] }
 0x460   :  { %1343 = vmatpush.bf16.msrb.mxu0 %v2044_v28 }
 0x461   :  { %v964_v33 = vmax.f32 %v963_v32, 0.0  ;;  %v1204_v20 = vpop.f32.mrf.mxu1 }
 0x463   :  { %v965_v34 = vadd.f32 0.8, %v964_v33 }
 0x464   :  { %1344 = vmatpush.bf16.msrb.mxu0 %v2043_v31 }
 0x465   :  { %2072 = vrsqrt.f32 %v965_v34  ;;  %vm972_vm1 = vweird.f32 %v965_v34 }
 0x46b   :  { %v2073_v35 = vpop.eup %2072 }
 0x46c   :  { %v967_v36 = vmul.f32 %v2073_v35, %v965_v34  ;;  %vm973_vm0 = vweird.f32 %v2073_v35 }
 0x46d   :  { %vm974_vm3 = vmor %vm972_vm1, %vm973_vm0 }
 0x46e   :  { %v968_v37 = vmul.f32 %v2073_v35, %v967_v36 }
 0x470   :  { %v969_v38 = vmul.f32 0.5, %v968_v37 }
 0x472   :  { %v970_v39 = vsub.f32 1.5, %v969_v38 }
 0x474   :  { %v971_v40 = vmul.f32 %v2073_v35, %v970_v39 }
 0x476   :  { %v975_v43 = vsel %vm974_vm3, %v2073_v35, %v971_v40  ;;  %v2042_v40 = vld [vmem:[%s2603_s9 + $0x20] sm:$0xff] }
 0x477   :  { %v979_v44 = vsel %vm978_vm2, %v975_v43, 0.0  ;;  %v977_v45 = vmul.f32 %v976_v42, %v975_v43  ;;  %1345 = vmatpush.bf16.msrb.mxu0 %v2042_v40 }
 0x478   :  { %981 = vrot.lane.b32.xlu1 %v979_v44, %s2107_s4 }
 0x479   :  { %v980_v46 = vsel %vm978_vm2, %v977_v45, 0.0 }
 0x47a   :  { %984 = vrot.lane.b32.xlu2 %v980_v46, %s2107_s4 }
 0x4d4   :  { %v985_v5 = vpop.permute.xlu2 %984 }
 0x4d5   :  { %v986_v8 = vadd.f32 %v985_v5, %v980_v46  ;;  %v2041_v46 = vld [vmem:[%s2603_s9 + $0x18] sm:$0xff] }
 0x4d6   :  { %1346 = vmatpush.bf16.msrb.mxu0 %v2041_v46 }
 0x4d7   :  { %v989_v12 = vperm.slane %v986_v8, 0 }
 0x4da   :  { %1347 = vmatpush.bf16.msrb.mxu0 %v2040_v50 }
 0x4de   :  { %1348 = vmatpush.bf16.msrb.mxu0 %v2039_v53 }
 0x4e2   :  { %1349 = vmatpush.bf16.msrb.mxu0 %v2038_v57 }
 0x4ea   :  { %v982_v6 = vpop.permute.xlu1 %981 }
 0x4eb   :  { %v983_v10 = vadd.f32 %v982_v6, %v979_v44 }
 0x4ed   :  { %v987_v11 = vperm.slane %v983_v10, 0 }
 0x4ef   :  { %v988_v13 = vmul.f32 %v987_v11, %v2447_v7  ;;  %v2048_v11 = vld [vmem:[%s2605_s11 + $0x10] sm:$0xff] }
 0x4f0   :  { %1430 = vmatpush.bf16.msrb.mxu1 %v2048_v11 }
 0x4f1   :  { %v990_v14 = vadd.f32 %v989_v12, %v988_v13 }
 0x4f3   :  { %991 = vst [vmem:[#allocation3 + $0x1] sm:$0xf] %v990_v14 }
 0x4fa   :  { %v992_v15 = vld [vmem:[#allocation3 + $0x1] ss:$2 sm:$0x3]  ;;  %v993_v16 = vld [vmem:[#allocation3 + $0x2] ss:$2 sm:$0x3] }
 0x4fb   :  { %v995_v18 = vpack.c.bf16 %v992_v15, %v992_v15  ;;  %v996_v17 = vpack.c.bf16 %v993_v16, %v993_v16  ;;  %v2047_v15 = vld [vmem:[%s2605_s11 + $0x8] sm:$0xff]  ;;  %v2046_v16 = vld [vmem:[%s2605_s11] sm:$0xff] }
 0x4fc   :  { %1431 = vmatpush.bf16.msrb.mxu1 %v2047_v15 }
 0x4fd   :  { %1214 = vmatmul.bf16.vlgmr.msra.gmra.mxu2 %v995_v18  ;;  %1227 = vmatmul.bf16.vlgmr.msra.gmra.mxu3 %v996_v17  ;;  %v2068_v18 = vld [vmem:[%s2604_s10] ss:$0 sm:$0xff]  ;;  %s2111_s10 = smov [#allocation4]  }
 0x4fe   :  { %s1468_s11 = sshll.u32 %s2111_s10, 4  ;;  %s1469_s11 = int_to_ptr.vmem [resolvable:$true] %s1468_s11 }
 0x500   :  { %1432 = vmatpush.bf16.msrb.mxu1 %v2046_v16 }
 0x580   :  { %v1215_v7 = vpop.f32.mrf.mxu2  ;;  %v1228_v25 = vpop.f32.mrf.mxu3 }
 0x581   :  { %v1216_v26 = vadd.f32 %v1215_v7, %v1203_v23 }
 0x583   :  { %v1229_v27 = vadd.f32 %v1228_v25, %v1216_v26 }
 0x585   :  { %vm1232_vm4 = vcmp.gt.f32.partialorder %v1229_v27, 0.0  ;;  %v1233_v29 = vmul.f32 0.2, %v1229_v27 }
 0x587   :  { %v1234_v30 = vsel %vm1232_vm4, %v1229_v27, %v1233_v29 }
 0x588   :  { %v1236_v32 = vsel %vm1235_vm5, %v1234_v30, 0.0  ;;  %v1243_v33 = vmul.f32 %v1234_v30, %v1234_v30  ;;  %v1217_v34 = vpop.f32.mrf.mxu2  ;;  %v1230_v35 = vpop.f32.mrf.mxu3 }
 0x589   :  { %v1237_v36 = vrot.slane %v1236_v32, 4 }
 0x58a   :  { %v1244_v37 = vsel %vm1235_vm5, %v1243_v33, 0.0 }
 0x58b   :  { %v1238_v38 = vadd.f32 %v1237_v36, %v1236_v32  ;;  %v1245_v39 = vrot.slane %v1244_v37, 4 }
 0x58d   :  { %v1239_v42 = vrot.slane %v1238_v38, 2  ;;  %v1246_v43 = vadd.f32 %v1245_v39, %v1244_v37 }
 0x58f   :  { %v1240_v44 = vadd.f32 %v1239_v42, %v1238_v38  ;;  %v1247_v45 = vrot.slane %v1246_v43, 2 }
 0x591   :  { %v1241_v47 = vrot.slane %v1240_v44, 1  ;;  %v1248_v48 = vadd.f32 %v1247_v45, %v1246_v43 }
 0x593   :  { %v1242_v9 = vadd.f32 %v1241_v47, %v1240_v44  ;;  %v1249_v49 = vrot.slane %v1248_v48, 1 }
 0x595   :  { %v1250_v51 = vadd.f32 %v1249_v49, %v1248_v48  ;;  %v1251_v52 = vmul.f32 0.5, %v1242_v9 }
 0x597   :  { %v1252_v54 = vmul.f32 0.5, %v1250_v51  ;;  %v1253_v55 = vmul.f32 %v1251_v52, %v1251_v52  ;;  %v1267_v5 = vsub.f32 0.0, %v1251_v52 }
 0x599   :  { %v1254_v56 = vsub.f32 %v1252_v54, %v1253_v55 }
 0x59b   :  { %v1255_v58 = vmax.f32 %v1254_v56, 0.0 }
 0x59d   :  { %v1256_v59 = vadd.f32 0.8, %v1255_v58 }
 0x59f   :  { %2074 = vrsqrt.f32 %v1256_v59  ;;  %vm1263_vm7 = vweird.f32 %v1256_v59 }
 0x5a5   :  { %v2075_v62 = vpop.eup %2074 }
 0x5a6   :  { %v1258_v63 = vmul.f32 %v2075_v62, %v1256_v59  ;;  %vm1264_vm6 = vweird.f32 %v2075_v62 }
 0x5a7   :  { %vm1265_vm8 = vmor %vm1263_vm7, %vm1264_vm6 }
 0x5a8   :  { %v1259_v0 = vmul.f32 %v2075_v62, %v1258_v63 }
 0x5aa   :  { %v1260_v22 = vmul.f32 0.5, %v1259_v0 }
 0x5ac   :  { %v1261_v2 = vsub.f32 1.5, %v1260_v22 }
 0x5ae   :  { %v1262_v4 = vmul.f32 %v2075_v62, %v1261_v2 }
 0x5b0   :  { %v1266_v6 = vsel %vm1265_vm8, %v2075_v62, %v1262_v4 }
 0x5b1   :  { %v1268_v8 = vmul.f32 %v1267_v5, %v1266_v6  ;;  %v1269_v10 = vmul.f32 %v1266_v6, %v1234_v30 }
 0x5b3   :  { %v1270_v12 = vadd.f32 %v1269_v10, %v1268_v8 }
 0x5b5   :  { %1271 = vst [vmem:[#allocation2 + $0x1] sm:$0x3] %v1270_v12 }
 0x5bc   :  { %v1272_v13 = vld [vmem:[#allocation2 + $0x1] sm:$0x3] }
 0x5bd   :  { %v1273_v14 = vpack.c.bf16 %v1272_v13, %v1272_v13 }
 0x5bf   :  { %1350 = vmatmul.bf16.vlgmr.msrb.gmra.mxu0 %v1273_v14 }
 0x63c   :  { %v1351_v17 = vpop.f32.mrf.mxu0 }
 0x63d   :  { %v1352_v19 = vadd.f32 %v2068_v18, %v1351_v17 }
 0x63f   :  { %v1355_v20 = vmax.f32 %v1352_v19, 0.0 }
 0x641   :  { %v1356_v21 = vpack.c.bf16 %v1355_v20, %v1355_v20 }
 0x643   :  { %1433 = vmatmul.bf16.vlgmr.msrb.gmra.mxu1 %v1356_v21 }
 0x644   :  { %v1353_v23 = vpop.f32.mrf.mxu0 }
 0x6c0   :  { %v1434_v7 = vpop.f32.mrf.mxu1 }
 0x6c1   :  { %v1435_v25 = vadd.f32 %v2069_v24, %v1434_v7 }
 0x6c3   :  { %v1438_v26 = vsel %vm1235_vm5, %v1435_v25, -inf }
 0x6c4   :  { %1439 = vmax.xlane.f32.xlu0 %v1438_v26 }
 0x6c8   :  { %v1436_v27 = vpop.f32.mrf.mxu1 }
 0x737   :  { %v1440_v28 = vpop.xlane.xlu0 %1439 }
 0x738   :  { %v1441_v29 = vsub.f32 %v1435_v25, %v1440_v28 }
 0x73a   :  { %v1442_v30 = vmul.f32 1.442695, %v1441_v29 }
 0x73c   :  { %2076 = vpow2.f32 %v1442_v30 }
 0x742   :  { %v2077_v31 = vpop.eup %2076 }
 0x743   :  { %v1444_v32 = vsel %vm1235_vm5, %v2077_v31, 0.0 }
 0x744   :  { %1445 = vadd.xlane.f32.xlu1 %v1444_v32 }
 0x7b7   :  { %v1446_v33 = vpop.xlane.xlu1 %1445 }
 0x7b8   :  { %2078 = vrcp.f32 %v1446_v33  ;;  %v1458_v37 = vand.u32 2147483648, %v1446_v33  ;;  %v1456_v39 = vand.u32 2147483647, %v1446_v33  ;;  %vm1452_vm10 = vweird.f32 %v1446_v33 }
 0x7ba   :  { %v1459_v42 = vor.u32 1.1754944e-38, %v1458_v37  ;;  %vm1457_vm12 = vcmp.eq.f32.partialorder %v1456_v39, 8.507059e+37 }
 0x7be   :  { %v2079_v34 = vpop.eup %2078 }
 0x7bf   :  { %v1448_v35 = vmul.f32 %v2079_v34, %v1446_v33  ;;  %vm1453_vm9 = vweird.f32 %v2079_v34 }
 0x7c0   :  { %vm1454_vm11 = vmor %vm1452_vm10, %vm1453_vm9 }
 0x7c1   :  { %v1449_v36 = vsub.f32 1.0, %v1448_v35 }
 0x7c3   :  { %v1450_v38 = vmul.f32 %v2079_v34, %v1449_v36 }
 0x7c5   :  { %v1451_v40 = vadd.f32 %v2079_v34, %v1450_v38 }
 0x7c7   :  { %v1455_v43 = vsel %vm1454_vm11, %v2079_v34, %v1451_v40 }
 0x7c8   :  { %v1460_v44 = vsel %vm1457_vm12, %v1459_v42, %v1455_v43 }
 0x7c9   :  { %v1461_v45 = vmul.f32 %v2077_v31, %v1460_v44 }
 0x7cb   :  { %1462 = vst [vmem:[#allocation4] sm:$0x3] %v1461_v45 }
 0x7cc   :  { %1473 = dma.vmem_to_hbm [thread:$0]  %s1469_s11, 32, %s1471_s20, [#allocation5]  }
 0x7cd   :  { %2104 = dma.done.wait [#allocation5], 32  }
 0x7ce   :  { %2105 = vsyncadd [#allocation5], 4294967264 }
 0x7cf   :  { %1478 = vsyncpa [#allocation5], 1 }

</bundles_post_ra>
